<compile_context>
chip_gen: v7x
topology: tpu7x:2x2x1
jax: 0.10.0
libtpu: 0.0.40
codegen_flags: <defaults>
</compile_context>

<pallas_src>
import functools

import jax
import jax.numpy as jnp
from jax.experimental import pallas as pl
from jax.experimental.pallas import tpu as pltpu


# ----------------------------------------------------------------------------
# Fused kernel: LN(q), LN(kv) + CrossAttn1 (+mask, +residual)  ->  reshape
#               LN(q), LN(kv) + CrossAttn2
# ----------------------------------------------------------------------------
def _ssmatch_kernel(*refs, dims, heads1, heads2, eps, has_mask):
    if has_mask:
        (qf_ref, pf_ref, vf_ref, mask_ref,
         ln1_ref, wqp1_ref, wkv1_ref,
         ln2_ref, wqp2_ref, wkv2_ref, out_ref) = refs
    else:
        (qf_ref, pf_ref, vf_ref,
         ln1_ref, wqp1_ref, wkv1_ref,
         ln2_ref, wqp2_ref, wkv2_ref, out_ref) = refs
        mask_ref = None

    B1, QN, Np, B2, S2, Nv, C = dims

    def layernorm(x, gamma, beta):
        mu = jnp.mean(x, axis=-1, keepdims=True)
        var = jnp.mean((x - mu) ** 2, axis=-1, keepdims=True)
        return (x - mu) * jax.lax.rsqrt(var + eps) * gamma + beta

    def cross_attention(q_flat, kv_flat, ln_ref, wqp_ref, wkv_ref,
                        b, q_len, kv_len, num_heads, mask):
        """q_flat: (b*q_len, C), kv_flat: (b*kv_len, C) -> (b*q_len, C)."""
        ln = ln_ref[...]                          # (8, C) packed slab
        gq, bq = ln[0:1, :], ln[1:2, :]
        gkv, bkv = ln[2:3, :], ln[3:4, :]
        bproj = ln[4:5, :]

        qn = layernorm(q_flat, gq, bq)            # (Rq, C)
        kvn = layernorm(kv_flat, gkv, bkv)        # (Rk, C)

        wq = wqp_ref[0]                           # (C, C), qk scale pre-folded
        wproj = wqp_ref[1]                        # (C, C)
        qp = jnp.dot(qn, wq, preferred_element_type=jnp.float32)        # (Rq, C)
        kvp = jnp.dot(kvn, wkv_ref[...], preferred_element_type=jnp.float32)  # (Rk, 2C)

        hd = C // num_heads
        ctx_parts = []
        for h in range(num_heads):                # num_heads is small & static
            qh = qp[:, h * hd:(h + 1) * hd].reshape(b, q_len, hd)
            kh = kvp[:, h * hd:(h + 1) * hd].reshape(b, kv_len, hd)
            vh = kvp[:, C + h * hd:C + (h + 1) * hd].reshape(b, kv_len, hd)

            logits = jnp.einsum("bqd,bkd->bqk", qh, kh,
                                preferred_element_type=jnp.float32)     # (b, q_len, kv_len)
            if mask is not None:
                logits = logits + mask

            m = jnp.max(logits, axis=-1, keepdims=True)
            e = jnp.exp(logits - m)
            s = jnp.sum(e, axis=-1, keepdims=True)
            attn = e * pl.reciprocal(s, approx=True)    # EUP slot, not VALU divide
            ctx = jnp.einsum("bqk,bkd->bqd", attn, vh,
                             preferred_element_type=jnp.float32)        # (b, q_len, hd)
            ctx_parts.append(ctx.reshape(b * q_len, hd))

        ctx_all = ctx_parts[0] if num_heads == 1 else jnp.concatenate(ctx_parts, axis=-1)
        return jnp.dot(ctx_all, wproj, preferred_element_type=jnp.float32) + bproj

    qf = qf_ref[...]                              # (B1*QN, C)
    pf = pf_ref[...]                              # (B1*Np, C)
    vf = vf_ref[...]                              # (B2*Nv, C)
    mask = mask_ref[...] if has_mask else None    # (B1, QN, Np) or None

    # attn1 + fused residual (matches: question_f = question_f + attn1(...))
    x1 = qf + cross_attention(qf, pf, ln1_ref, wqp1_ref, wkv1_ref,
                              B1, QN, Np, heads1, mask)

    # reshape (B1*QN, C) -> (B2, S2, C) is a pure leading-dim re-view (done via
    # the b/q_len arguments of attn2) — the intermediate never leaves VMEM.
    x2 = cross_attention(x1, vf, ln2_ref, wqp2_ref, wkv2_ref,
                         B2, S2, Nv, heads2, None)

    out_ref[...] = x2                             # (B1*QN, C)


# ----------------------------------------------------------------------------
# Parameter packing (done ONCE, outside the hot path)
# ----------------------------------------------------------------------------
def pack_cross_attn_params(p, num_heads, dim):
    hd = dim // num_heads
    scale = float(hd ** (-0.5))
    ln = jnp.zeros((8, dim), jnp.float32)
    ln = ln.at[0].set(p["gq"].reshape(dim))
    ln = ln.at[1].set(p["bq"].reshape(dim))
    ln = ln.at[2].set(p["gkv"].reshape(dim))
    ln = ln.at[3].set(p["bkv"].reshape(dim))
    ln = ln.at[4].set(p["bproj"].reshape(dim))
    wqp = jnp.stack([p["wq"] * scale, p["wproj"]], axis=0)     # (2, dim, dim)
    return {"ln": ln, "wqp": wqp, "wkv": p["wkv"]}             # wkv: (dim, 2*dim)


# ----------------------------------------------------------------------------
# Wrapper: single fused pallas_call for the whole SSMatchLayer forward
# ----------------------------------------------------------------------------
def ssmatch_layer_forward(params, question_f, prompt_f, visual_f, mask=None,
                          *, is_last_layer=False, eps=1e-6):
    B1, QN, C = question_f.shape
    _, Np, _ = prompt_f.shape
    B2, Nv, _ = visual_f.shape
    R1 = B1 * QN
    assert R1 % B2 == 0, "question rows must reshape onto the visual batch"
    S2 = R1 // B2
    heads1, heads2 = params["heads1"], params["heads2"]
    assert C % heads1 == 0 and C % heads2 == 0
    has_mask = mask is not None

    # HBM-level flattens (free); the kernel works on clean (rows, C) slabs.
    qf = question_f.reshape(R1, C)
    pf = prompt_f.reshape(B1 * Np, C)
    vf = visual_f.reshape(B2 * Nv, C)

    a1, a2 = params["attn1"], params["attn2"]
    args = [qf, pf, vf]
    if has_mask:
        args.append(mask)
    args += [a1["ln"], a1["wqp"], a1["wkv"], a2["ln"], a2["wqp"], a2["wkv"]]

    def full_spec(shape):
        return pl.BlockSpec(shape, lambda *_: (0,) * len(shape))

    kernel = functools.partial(
        _ssmatch_kernel,
        dims=(B1, QN, Np, B2, S2, Nv, C),
        heads1=heads1, heads2=heads2, eps=eps, has_mask=has_mask)

    # Advisory cost estimate (helps XLA schedule around a microsecond-scale call).
    flops = int(
        2 * R1 * C * C + 2 * (B1 * Np) * C * (2 * C) + 2 * R1 * C * C + 4 * B1 * QN * Np * C
        + 2 * R1 * C * C + 2 * (B2 * Nv) * C * (2 * C) + 2 * R1 * C * C + 4 * B2 * S2 * Nv * C)
    transcendentals = int(B1 * QN * Np * heads1 + B2 * S2 * Nv * heads2
                          + 2 * (R1 + B1 * Np + B2 * Nv))
    bytes_accessed = int(4 * (sum(a.size for a in args) + R1 * C))

    out = pl.pallas_call(
        kernel,
        out_shape=jax.ShapeDtypeStruct((R1, C), jnp.float32),
        grid=(1,),
        in_specs=[full_spec(a.shape) for a in args],
        out_specs=full_spec((R1, C)),
        compiler_params=pltpu.CompilerParams(dimension_semantics=("arbitrary",)),
        cost_estimate=pl.CostEstimate(flops=flops,
                                      transcendentals=transcendentals,
                                      bytes_accessed=bytes_accessed),
    )(*args)

    if is_last_layer:
        return out.reshape(B2, S2, C)
    # flatten(0, 1).unsqueeze(1)  -- free HBM-level reshape
    return out[:, None, :]

# TODO(synk): attn_drop / proj_drop / drop_path are inference-time identities
# (p=0.0 / eval mode) and are therefore omitted.


# ----------------------------------------------------------------------------
# Deterministic parameter init (synthetic — shapes follow the module __init__)
# ----------------------------------------------------------------------------
def make_cross_attn_params(key, dim):
    ks = jax.random.split(key, 3)
    return {
        "gq": jnp.ones((1, dim), jnp.float32),
        "bq": jnp.zeros((1, dim), jnp.float32),
        "gkv": jnp.ones((1, dim), jnp.float32),
        "bkv": jnp.zeros((1, dim), jnp.float32),
        "wq": 0.02 * jax.random.normal(ks[0], (dim, dim), jnp.float32),
        "wkv": 0.02 * jax.random.normal(ks[1], (dim, 2 * dim), jnp.float32),
        "wproj": 0.02 * jax.random.normal(ks[2], (dim, dim), jnp.float32),
        "bproj": jnp.zeros((1, dim), jnp.float32),
    }


# ----------------------------------------------------------------------------
# Pure-JAX reference (mirrors the PyTorch math) for correctness checking
# ----------------------------------------------------------------------------
def _ref_cross_attn(q, kv, mask, p, num_heads, eps):
    def ln(x, g, b):
        mu = x.mean(-1, keepdims=True)
        var = ((x - mu) ** 2).mean(-1, keepdims=True)
        return (x - mu) / jnp.sqrt(var + eps) * g[0] + b[0]

    B, QN, C = q.shape
    N = kv.shape[1]
    hd = C // num_heads
    scale = hd ** (-0.5)
    qn = ln(q, p["gq"], p["bq"])
    kvn = ln(kv, p["gkv"], p["bkv"])
    qp = (qn @ p["wq"]).reshape(B, QN, num_heads, hd).transpose(0, 2, 1, 3) * scale
    kvp = (kvn @ p["wkv"]).reshape(B, N, 2, num_heads, hd).transpose(2, 0, 3, 1, 4)
    k, v = kvp[0], kvp[1]
    attn = jnp.einsum("bhqd,bhkd->bhqk", qp, k)
    if mask is not None:
        attn = attn + mask[:, None]
    attn = jax.nn.softmax(attn, -1)
    x = jnp.einsum("bhqk,bhkd->bhqd", attn, v).transpose(0, 2, 1, 3).reshape(B, QN, C)
    return x @ p["wproj"] + p["bproj"][0]


def _ref_forward(params, question_f, prompt_f, visual_f, mask, eps=1e-6):
    dim = question_f.shape[-1]
    qf = question_f + _ref_cross_attn(question_f, prompt_f, mask, params["attn1"],
                                      params["heads1"], eps)
    qf = qf.reshape(visual_f.shape[0], -1, dim)
    out = _ref_cross_attn(qf, visual_f, None, params["attn2"], params["heads2"], eps)
    return out.reshape(-1, dim)[:, None, :]


# ----------------------------------------------------------------------------
if __name__ == "__main__":
    key = jax.random.PRNGKey(0)

    # module config: dim=64 -> nextq2subs_head2 = dim // 32 = 2, dynq2img_heads = 2
    dim = 64
    heads1 = dim // 32
    heads2 = 2

    # SMTR-style shapes: question_f (B*S, 1, dim), prompt_f (B*S, Np, dim),
    # visual_f (B, Nv, dim); question reshapes to (B, S, dim) between the attns.
    B, S, QN, Np, Nv = 2, 4, 1, 8, 16
    B1 = B * S

    k_q, k_p, k_v, k_p1, k_p2 = jax.random.split(key, 5)
    question_f = jax.random.normal(k_q, (B1, QN, dim), jnp.float32)
    prompt_f = jax.random.normal(k_p, (B1, Np, dim), jnp.float32)
    visual_f = jax.random.normal(k_v, (B, Nv, dim), jnp.float32)
    # additive attention mask (last two prompt positions masked out)
    mask = jnp.zeros((B1, QN, Np), jnp.float32).at[:, :, -2:].set(-1e9)

    raw_params = {
        "heads1": heads1,
        "heads2": heads2,
        "attn1": make_cross_attn_params(k_p1, dim),
        "attn2": make_cross_attn_params(k_p2, dim),
    }
    packed_params = {
        "heads1": heads1,
        "heads2": heads2,
        "attn1": pack_cross_attn_params(raw_params["attn1"], heads1, dim),
        "attn2": pack_cross_attn_params(raw_params["attn2"], heads2, dim),
    }

    out = ssmatch_layer_forward(packed_params, question_f, prompt_f, visual_f, mask,
                                is_last_layer=False)
    out = jax.block_until_ready(out)

    ref = _ref_forward(raw_params, question_f, prompt_f, visual_f, mask)
    assert out.shape == (B1 * QN, 1, dim), out.shape
    assert jnp.allclose(out, ref, atol=2e-3, rtol=2e-3), float(jnp.abs(out - ref).max())

    print("KERNEL_OK")
</pallas_src>

<mosaic_0001>
module attributes {stable_mosaic.version = 11 : i64} {
  func.func @_ssmatch_kernel(%arg0: i32, %arg1: memref<8x64xf32, #tpu.memory_space<vmem>>, %arg2: memref<64x64xf32, #tpu.memory_space<vmem>>, %arg3: memref<32x64xf32, #tpu.memory_space<vmem>>, %arg4: memref<8x1x8xf32, #tpu.memory_space<vmem>>, %arg5: memref<8x64xf32, #tpu.memory_space<vmem>>, %arg6: memref<2x64x64xf32, #tpu.memory_space<vmem>>, %arg7: memref<64x128xf32, #tpu.memory_space<vmem>>, %arg8: memref<8x64xf32, #tpu.memory_space<vmem>>, %arg9: memref<2x64x64xf32, #tpu.memory_space<vmem>>, %arg10: memref<64x128xf32, #tpu.memory_space<vmem>>, %arg11: memref<8x64xf32, #tpu.memory_space<vmem>>) attributes {dimension_semantics = [#tpu.dimension_semantics<arbitrary>], iteration_bounds = array<i64: 1>, scalar_prefetch = 0 : i64, scratch_operands = 0 : i64, tpu.core_type = #tpu.core_type<tc>, window_params = [{pipeline_mode = #tpu.pipeline_mode<synchronous>, transform_indices = @transform_0, window_bounds = array<i64: 8, 64>}, {pipeline_mode = #tpu.pipeline_mode<synchronous>, transform_indices = @transform_1, window_bounds = array<i64: 64, 64>}, {pipeline_mode = #tpu.pipeline_mode<synchronous>, transform_indices = @transform_2, window_bounds = array<i64: 32, 64>}, {pipeline_mode = #tpu.pipeline_mode<synchronous>, transform_indices = @transform_3, window_bounds = array<i64: 8, 1, 8>}, {pipeline_mode = #tpu.pipeline_mode<synchronous>, transform_indices = @transform_4, window_bounds = array<i64: 8, 64>}, {pipeline_mode = #tpu.pipeline_mode<synchronous>, transform_indices = @transform_5, window_bounds = array<i64: 2, 64, 64>}, {pipeline_mode = #tpu.pipeline_mode<synchronous>, transform_indices = @transform_6, window_bounds = array<i64: 64, 128>}, {pipeline_mode = #tpu.pipeline_mode<synchronous>, transform_indices = @transform_7, window_bounds = array<i64: 8, 64>}, {pipeline_mode = #tpu.pipeline_mode<synchronous>, transform_indices = @transform_8, window_bounds = array<i64: 2, 64, 64>}, {pipeline_mode = #tpu.pipeline_mode<synchronous>, transform_indices = @transform_9, window_bounds = array<i64: 64, 128>}, {pipeline_mode = #tpu.pipeline_mode<synchronous>, transform_indices = @transform_10, window_bounds = array<i64: 8, 64>}]} {
    %c0 = arith.constant 0 : index
    %c0_0 = arith.constant 0 : index
    %0 = vector.load %arg1[%c0, %c0_0] : memref<8x64xf32, #tpu.memory_space<vmem>>, vector<8x64xf32>
    %c0_1 = arith.constant 0 : index
    %c0_2 = arith.constant 0 : index
    %1 = vector.load %arg2[%c0_1, %c0_2] : memref<64x64xf32, #tpu.memory_space<vmem>>, vector<64x64xf32>
    %c0_3 = arith.constant 0 : index
    %c0_4 = arith.constant 0 : index
    %2 = vector.load %arg3[%c0_3, %c0_4] : memref<32x64xf32, #tpu.memory_space<vmem>>, vector<32x64xf32>
    %c0_5 = arith.constant 0 : index
    %c0_6 = arith.constant 0 : index
    %c0_7 = arith.constant 0 : index
    %3 = vector.load %arg4[%c0_5, %c0_6, %c0_7] : memref<8x1x8xf32, #tpu.memory_space<vmem>>, vector<8x1x8xf32>
    %c0_8 = arith.constant 0 : index
    %c0_9 = arith.constant 0 : index
    %4 = vector.load %arg5[%c0_8, %c0_9] : memref<8x64xf32, #tpu.memory_space<vmem>>, vector<8x64xf32>
    %5 = vector.extract_strided_slice %4 {offsets = [0, 0], sizes = [1, 64], strides = [1, 1]} : vector<8x64xf32> to vector<1x64xf32>
    %6 = vector.extract_strided_slice %4 {offsets = [1, 0], sizes = [1, 64], strides = [1, 1]} : vector<8x64xf32> to vector<1x64xf32>
    %7 = vector.extract_strided_slice %4 {offsets = [2, 0], sizes = [1, 64], strides = [1, 1]} : vector<8x64xf32> to vector<1x64xf32>
    %8 = vector.extract_strided_slice %4 {offsets = [3, 0], sizes = [1, 64], strides = [1, 1]} : vector<8x64xf32> to vector<1x64xf32>
    %9 = vector.extract_strided_slice %4 {offsets = [4, 0], sizes = [1, 64], strides = [1, 1]} : vector<8x64xf32> to vector<1x64xf32>
    %cst = arith.constant dense<0.000000e+00> : vector<8xf32>
    %10 = vector.multi_reduction <add>, %0, %cst [1] : vector<8x64xf32> to vector<8xf32>
    %11 = vector.shape_cast %10 : vector<8xf32> to vector<8x1xf32>
    %cst_10 = arith.constant 6.400000e+01 : f32
    %12 = vector.broadcast %cst_10 : f32 to vector<8x1xf32>
    %13 = arith.divf %11, %12 : vector<8x1xf32>
    %14 = vector.broadcast %13 : vector<8x1xf32> to vector<8x64xf32>
    %15 = arith.subf %0, %14 : vector<8x64xf32>
    %16 = arith.mulf %15, %15 : vector<8x64xf32>
    %cst_11 = arith.constant dense<0.000000e+00> : vector<8xf32>
    %17 = vector.multi_reduction <add>, %16, %cst_11 [1] : vector<8x64xf32> to vector<8xf32>
    %18 = vector.shape_cast %17 : vector<8xf32> to vector<8x1xf32>
    %cst_12 = arith.constant 6.400000e+01 : f32
    %19 = vector.broadcast %cst_12 : f32 to vector<8x1xf32>
    %20 = arith.divf %18, %19 : vector<8x1xf32>
    %21 = vector.broadcast %13 : vector<8x1xf32> to vector<8x64xf32>
    %22 = arith.subf %0, %21 : vector<8x64xf32>
    %cst_13 = arith.constant 9.99999997E-7 : f32
    %23 = vector.broadcast %cst_13 : f32 to vector<8x1xf32>
    %24 = arith.addf %20, %23 : vector<8x1xf32>
    %25 = math.rsqrt %24 : vector<8x1xf32>
    %26 = vector.broadcast %25 : vector<8x1xf32> to vector<8x64xf32>
    %27 = arith.mulf %22, %26 : vector<8x64xf32>
    %28 = vector.broadcast %5 : vector<1x64xf32> to vector<8x64xf32>
    %29 = arith.mulf %27, %28 : vector<8x64xf32>
    %30 = vector.broadcast %6 : vector<1x64xf32> to vector<8x64xf32>
    %31 = arith.addf %29, %30 : vector<8x64xf32>
    %cst_14 = arith.constant dense<0.000000e+00> : vector<64xf32>
    %32 = vector.multi_reduction <add>, %1, %cst_14 [1] : vector<64x64xf32> to vector<64xf32>
    %33 = vector.shape_cast %32 : vector<64xf32> to vector<64x1xf32>
    %cst_15 = arith.constant 6.400000e+01 : f32
    %34 = vector.broadcast %cst_15 : f32 to vector<64x1xf32>
    %35 = arith.divf %33, %34 : vector<64x1xf32>
    %36 = vector.broadcast %35 : vector<64x1xf32> to vector<64x64xf32>
    %37 = arith.subf %1, %36 : vector<64x64xf32>
    %38 = arith.mulf %37, %37 : vector<64x64xf32>
    %cst_16 = arith.constant dense<0.000000e+00> : vector<64xf32>
    %39 = vector.multi_reduction <add>, %38, %cst_16 [1] : vector<64x64xf32> to vector<64xf32>
    %40 = vector.shape_cast %39 : vector<64xf32> to vector<64x1xf32>
    %cst_17 = arith.constant 6.400000e+01 : f32
    %41 = vector.broadcast %cst_17 : f32 to vector<64x1xf32>
    %42 = arith.divf %40, %41 : vector<64x1xf32>
    %43 = vector.broadcast %35 : vector<64x1xf32> to vector<64x64xf32>
    %44 = arith.subf %1, %43 : vector<64x64xf32>
    %cst_18 = arith.constant 9.99999997E-7 : f32
    %45 = vector.broadcast %cst_18 : f32 to vector<64x1xf32>
    %46 = arith.addf %42, %45 : vector<64x1xf32>
    %47 = math.rsqrt %46 : vector<64x1xf32>
    %48 = vector.broadcast %47 : vector<64x1xf32> to vector<64x64xf32>
    %49 = arith.mulf %44, %48 : vector<64x64xf32>
    %50 = vector.broadcast %7 : vector<1x64xf32> to vector<64x64xf32>
    %51 = arith.mulf %49, %50 : vector<64x64xf32>
    %52 = vector.broadcast %8 : vector<1x64xf32> to vector<64x64xf32>
    %53 = arith.addf %51, %52 : vector<64x64xf32>
    %c0_19 = arith.constant 0 : index
    %c0_20 = arith.constant 0 : index
    %c0_21 = arith.constant 0 : index
    %54 = vector.load %arg6[%c0_19, %c0_20, %c0_21] : memref<2x64x64xf32, #tpu.memory_space<vmem>>, vector<1x64x64xf32>
    %55 = vector.shape_cast %54 : vector<1x64x64xf32> to vector<64x64xf32>
    %c1 = arith.constant 1 : index
    %c0_22 = arith.constant 0 : index
    %c0_23 = arith.constant 0 : index
    %56 = vector.load %arg6[%c1, %c0_22, %c0_23] : memref<2x64x64xf32, #tpu.memory_space<vmem>>, vector<1x64x64xf32>
    %57 = vector.shape_cast %56 : vector<1x64x64xf32> to vector<64x64xf32>
    %cst_24 = arith.constant dense<0.000000e+00> : vector<8x64xf32>
    %58 = tpu.matmul %31, %55, %cst_24 {dimension_numbers = #tpu.dot_dimension_numbers<[1], [0], [0], [1], [0, 0, 1, 1], [], []>} : vector<8x64xf32>, vector<64x64xf32>, vector<8x64xf32> -> vector<8x64xf32>
    %c0_25 = arith.constant 0 : index
    %c0_26 = arith.constant 0 : index
    %59 = vector.load %arg7[%c0_25, %c0_26] : memref<64x128xf32, #tpu.memory_space<vmem>>, vector<64x128xf32>
    %cst_27 = arith.constant dense<0.000000e+00> : vector<64x128xf32>
    %60 = tpu.matmul %53, %59, %cst_27 {dimension_numbers = #tpu.dot_dimension_numbers<[1], [0], [0], [1], [0, 0, 1, 1], [], []>} : vector<64x64xf32>, vector<64x128xf32>, vector<64x128xf32> -> vector<64x128xf32>
    %61 = vector.extract_strided_slice %58 {offsets = [0, 0], sizes = [8, 32], strides = [1, 1]} : vector<8x64xf32> to vector<8x32xf32>
    %62 = vector.shape_cast %61 : vector<8x32xf32> to vector<8x1x32xf32>
    %63 = vector.extract_strided_slice %60 {offsets = [0, 0], sizes = [64, 32], strides = [1, 1]} : vector<64x128xf32> to vector<64x32xf32>
    %64 = vector.shape_cast %63 : vector<64x32xf32> to vector<8x8x32xf32>
    %65 = vector.extract_strided_slice %60 {offsets = [0, 64], sizes = [64, 32], strides = [1, 1]} : vector<64x128xf32> to vector<64x32xf32>
    %66 = vector.shape_cast %65 : vector<64x32xf32> to vector<8x8x32xf32>
    "tpu.trace_start"() <{level = 10 : i32, message = "bqd,bkd->bqk"}> : () -> ()
    %cst_28 = arith.constant dense<0.000000e+00> : vector<8x1x8xf32>
    %67 = tpu.matmul %62, %64, %cst_28 {dimension_numbers = #tpu.dot_dimension_numbers<[2], [2], [1], [1], [0, 0, 0, 1, 1, 1], [0], [0]>} : vector<8x1x32xf32>, vector<8x8x32xf32>, vector<8x1x8xf32> -> vector<8x1x8xf32>
    "tpu.trace_stop"() : () -> ()
    %68 = arith.addf %67, %3 : vector<8x1x8xf32>
    %cst_29 = arith.constant dense<0xFF800000> : vector<8x1xf32>
    %69 = vector.multi_reduction <maximumf>, %68, %cst_29 [2] : vector<8x1x8xf32> to vector<8x1xf32>
    %70 = vector.shape_cast %69 : vector<8x1xf32> to vector<8x1x1xf32>
    %71 = vector.broadcast %70 : vector<8x1x1xf32> to vector<8x1x8xf32>
    %72 = arith.subf %68, %71 : vector<8x1x8xf32>
    %73 = math.exp %72 : vector<8x1x8xf32>
    %cst_30 = arith.constant dense<0.000000e+00> : vector<8x1xf32>
    %74 = vector.multi_reduction <add>, %73, %cst_30 [2] : vector<8x1x8xf32> to vector<8x1xf32>
    %75 = vector.shape_cast %74 : vector<8x1xf32> to vector<8x1x1xf32>
    %76 = tpu.reciprocal %75 {approx = true} : vector<8x1x1xf32> -> vector<8x1x1xf32>
    %77 = vector.broadcast %76 : vector<8x1x1xf32> to vector<8x1x8xf32>
    %78 = arith.mulf %73, %77 : vector<8x1x8xf32>
    "tpu.trace_start"() <{level = 10 : i32, message = "bqk,bkd->bqd"}> : () -> ()
    %cst_31 = arith.constant dense<0.000000e+00> : vector<8x1x32xf32>
    %79 = tpu.matmul %78, %66, %cst_31 {dimension_numbers = #tpu.dot_dimension_numbers<[2], [1], [1], [2], [0, 0, 0, 1, 1, 2], [0], [0]>} : vector<8x1x8xf32>, vector<8x8x32xf32>, vector<8x1x32xf32> -> vector<8x1x32xf32>
    "tpu.trace_stop"() : () -> ()
    %80 = vector.shape_cast %79 : vector<8x1x32xf32> to vector<8x32xf32>
    %81 = vector.extract_strided_slice %58 {offsets = [0, 32], sizes = [8, 32], strides = [1, 1]} : vector<8x64xf32> to vector<8x32xf32>
    %82 = vector.shape_cast %81 : vector<8x32xf32> to vector<8x1x32xf32>
    %83 = vector.extract_strided_slice %60 {offsets = [0, 32], sizes = [64, 32], strides = [1, 1]} : vector<64x128xf32> to vector<64x32xf32>
    %84 = vector.shape_cast %83 : vector<64x32xf32> to vector<8x8x32xf32>
    %85 = vector.extract_strided_slice %60 {offsets = [0, 96], sizes = [64, 32], strides = [1, 1]} : vector<64x128xf32> to vector<64x32xf32>
    %86 = vector.shape_cast %85 : vector<64x32xf32> to vector<8x8x32xf32>
    "tpu.trace_start"() <{level = 10 : i32, message = "bqd,bkd->bqk"}> : () -> ()
    %cst_32 = arith.constant dense<0.000000e+00> : vector<8x1x8xf32>
    %87 = tpu.matmul %82, %84, %cst_32 {dimension_numbers = #tpu.dot_dimension_numbers<[2], [2], [1], [1], [0, 0, 0, 1, 1, 1], [0], [0]>} : vector<8x1x32xf32>, vector<8x8x32xf32>, vector<8x1x8xf32> -> vector<8x1x8xf32>
    "tpu.trace_stop"() : () -> ()
    %88 = arith.addf %87, %3 : vector<8x1x8xf32>
    %cst_33 = arith.constant dense<0xFF800000> : vector<8x1xf32>
    %89 = vector.multi_reduction <maximumf>, %88, %cst_33 [2] : vector<8x1x8xf32> to vector<8x1xf32>
    %90 = vector.shape_cast %89 : vector<8x1xf32> to vector<8x1x1xf32>
    %91 = vector.broadcast %90 : vector<8x1x1xf32> to vector<8x1x8xf32>
    %92 = arith.subf %88, %91 : vector<8x1x8xf32>
    %93 = math.exp %92 : vector<8x1x8xf32>
    %cst_34 = arith.constant dense<0.000000e+00> : vector<8x1xf32>
    %94 = vector.multi_reduction <add>, %93, %cst_34 [2] : vector<8x1x8xf32> to vector<8x1xf32>
    %95 = vector.shape_cast %94 : vector<8x1xf32> to vector<8x1x1xf32>
    %96 = tpu.reciprocal %95 {approx = true} : vector<8x1x1xf32> -> vector<8x1x1xf32>
    %97 = vector.broadcast %96 : vector<8x1x1xf32> to vector<8x1x8xf32>
    %98 = arith.mulf %93, %97 : vector<8x1x8xf32>
    "tpu.trace_start"() <{level = 10 : i32, message = "bqk,bkd->bqd"}> : () -> ()
    %cst_35 = arith.constant dense<0.000000e+00> : vector<8x1x32xf32>
    %99 = tpu.matmul %98, %86, %cst_35 {dimension_numbers = #tpu.dot_dimension_numbers<[2], [1], [1], [2], [0, 0, 0, 1, 1, 2], [0], [0]>} : vector<8x1x8xf32>, vector<8x8x32xf32>, vector<8x1x32xf32> -> vector<8x1x32xf32>
    "tpu.trace_stop"() : () -> ()
    %100 = vector.shape_cast %99 : vector<8x1x32xf32> to vector<8x32xf32>
    %101 = tpu.concatenate %80, %100 in 1 : vector<8x32xf32>, vector<8x32xf32> -> vector<8x64xf32>
    %cst_36 = arith.constant dense<0.000000e+00> : vector<8x64xf32>
    %102 = tpu.matmul %101, %57, %cst_36 {dimension_numbers = #tpu.dot_dimension_numbers<[1], [0], [0], [1], [0, 0, 1, 1], [], []>} : vector<8x64xf32>, vector<64x64xf32>, vector<8x64xf32> -> vector<8x64xf32>
    %103 = vector.broadcast %9 : vector<1x64xf32> to vector<8x64xf32>
    %104 = arith.addf %102, %103 : vector<8x64xf32>
    %105 = arith.addf %0, %104 : vector<8x64xf32>
    %c0_37 = arith.constant 0 : index
    %c0_38 = arith.constant 0 : index
    %106 = vector.load %arg8[%c0_37, %c0_38] : memref<8x64xf32, #tpu.memory_space<vmem>>, vector<8x64xf32>
    %107 = vector.extract_strided_slice %106 {offsets = [0, 0], sizes = [1, 64], strides = [1, 1]} : vector<8x64xf32> to vector<1x64xf32>
    %108 = vector.extract_strided_slice %106 {offsets = [1, 0], sizes = [1, 64], strides = [1, 1]} : vector<8x64xf32> to vector<1x64xf32>
    %109 = vector.extract_strided_slice %106 {offsets = [2, 0], sizes = [1, 64], strides = [1, 1]} : vector<8x64xf32> to vector<1x64xf32>
    %110 = vector.extract_strided_slice %106 {offsets = [3, 0], sizes = [1, 64], strides = [1, 1]} : vector<8x64xf32> to vector<1x64xf32>
    %111 = vector.extract_strided_slice %106 {offsets = [4, 0], sizes = [1, 64], strides = [1, 1]} : vector<8x64xf32> to vector<1x64xf32>
    %cst_39 = arith.constant dense<0.000000e+00> : vector<8xf32>
    %112 = vector.multi_reduction <add>, %105, %cst_39 [1] : vector<8x64xf32> to vector<8xf32>
    %113 = vector.shape_cast %112 : vector<8xf32> to vector<8x1xf32>
    %cst_40 = arith.constant 6.400000e+01 : f32
    %114 = vector.broadcast %cst_40 : f32 to vector<8x1xf32>
    %115 = arith.divf %113, %114 : vector<8x1xf32>
    %116 = vector.broadcast %115 : vector<8x1xf32> to vector<8x64xf32>
    %117 = arith.subf %105, %116 : vector<8x64xf32>
    %118 = arith.mulf %117, %117 : vector<8x64xf32>
    %cst_41 = arith.constant dense<0.000000e+00> : vector<8xf32>
    %119 = vector.multi_reduction <add>, %118, %cst_41 [1] : vector<8x64xf32> to vector<8xf32>
    %120 = vector.shape_cast %119 : vector<8xf32> to vector<8x1xf32>
    %cst_42 = arith.constant 6.400000e+01 : f32
    %121 = vector.broadcast %cst_42 : f32 to vector<8x1xf32>
    %122 = arith.divf %120, %121 : vector<8x1xf32>
    %123 = vector.broadcast %115 : vector<8x1xf32> to vector<8x64xf32>
    %124 = arith.subf %105, %123 : vector<8x64xf32>
    %cst_43 = arith.constant 9.99999997E-7 : f32
    %125 = vector.broadcast %cst_43 : f32 to vector<8x1xf32>
    %126 = arith.addf %122, %125 : vector<8x1xf32>
    %127 = math.rsqrt %126 : vector<8x1xf32>
    %128 = vector.broadcast %127 : vector<8x1xf32> to vector<8x64xf32>
    %129 = arith.mulf %124, %128 : vector<8x64xf32>
    %130 = vector.broadcast %107 : vector<1x64xf32> to vector<8x64xf32>
    %131 = arith.mulf %129, %130 : vector<8x64xf32>
    %132 = vector.broadcast %108 : vector<1x64xf32> to vector<8x64xf32>
    %133 = arith.addf %131, %132 : vector<8x64xf32>
    %cst_44 = arith.constant dense<0.000000e+00> : vector<32xf32>
    %134 = vector.multi_reduction <add>, %2, %cst_44 [1] : vector<32x64xf32> to vector<32xf32>
    %135 = vector.shape_cast %134 : vector<32xf32> to vector<32x1xf32>
    %cst_45 = arith.constant 6.400000e+01 : f32
    %136 = vector.broadcast %cst_45 : f32 to vector<32x1xf32>
    %137 = arith.divf %135, %136 : vector<32x1xf32>
    %138 = vector.broadcast %137 : vector<32x1xf32> to vector<32x64xf32>
    %139 = arith.subf %2, %138 : vector<32x64xf32>
    %140 = arith.mulf %139, %139 : vector<32x64xf32>
    %cst_46 = arith.constant dense<0.000000e+00> : vector<32xf32>
    %141 = vector.multi_reduction <add>, %140, %cst_46 [1] : vector<32x64xf32> to vector<32xf32>
    %142 = vector.shape_cast %141 : vector<32xf32> to vector<32x1xf32>
    %cst_47 = arith.constant 6.400000e+01 : f32
    %143 = vector.broadcast %cst_47 : f32 to vector<32x1xf32>
    %144 = arith.divf %142, %143 : vector<32x1xf32>
    %145 = vector.broadcast %137 : vector<32x1xf32> to vector<32x64xf32>
    %146 = arith.subf %2, %145 : vector<32x64xf32>
    %cst_48 = arith.constant 9.99999997E-7 : f32
    %147 = vector.broadcast %cst_48 : f32 to vector<32x1xf32>
    %148 = arith.addf %144, %147 : vector<32x1xf32>
    %149 = math.rsqrt %148 : vector<32x1xf32>
    %150 = vector.broadcast %149 : vector<32x1xf32> to vector<32x64xf32>
    %151 = arith.mulf %146, %150 : vector<32x64xf32>
    %152 = vector.broadcast %109 : vector<1x64xf32> to vector<32x64xf32>
    %153 = arith.mulf %151, %152 : vector<32x64xf32>
    %154 = vector.broadcast %110 : vector<1x64xf32> to vector<32x64xf32>
    %155 = arith.addf %153, %154 : vector<32x64xf32>
    %c0_49 = arith.constant 0 : index
    %c0_50 = arith.constant 0 : index
    %c0_51 = arith.constant 0 : index
    %156 = vector.load %arg9[%c0_49, %c0_50, %c0_51] : memref<2x64x64xf32, #tpu.memory_space<vmem>>, vector<1x64x64xf32>
    %157 = vector.shape_cast %156 : vector<1x64x64xf32> to vector<64x64xf32>
    %c1_52 = arith.constant 1 : index
    %c0_53 = arith.constant 0 : index
    %c0_54 = arith.constant 0 : index
    %158 = vector.load %arg9[%c1_52, %c0_53, %c0_54] : memref<2x64x64xf32, #tpu.memory_space<vmem>>, vector<1x64x64xf32>
    %159 = vector.shape_cast %158 : vector<1x64x64xf32> to vector<64x64xf32>
    %cst_55 = arith.constant dense<0.000000e+00> : vector<8x64xf32>
    %160 = tpu.matmul %133, %157, %cst_55 {dimension_numbers = #tpu.dot_dimension_numbers<[1], [0], [0], [1], [0, 0, 1, 1], [], []>} : vector<8x64xf32>, vector<64x64xf32>, vector<8x64xf32> -> vector<8x64xf32>
    %c0_56 = arith.constant 0 : index
    %c0_57 = arith.constant 0 : index
    %161 = vector.load %arg10[%c0_56, %c0_57] : memref<64x128xf32, #tpu.memory_space<vmem>>, vector<64x128xf32>
    %cst_58 = arith.constant dense<0.000000e+00> : vector<32x128xf32>
    %162 = tpu.matmul %155, %161, %cst_58 {dimension_numbers = #tpu.dot_dimension_numbers<[1], [0], [0], [1], [0, 0, 1, 1], [], []>} : vector<32x64xf32>, vector<64x128xf32>, vector<32x128xf32> -> vector<32x128xf32>
    %163 = vector.extract_strided_slice %160 {offsets = [0, 0], sizes = [8, 32], strides = [1, 1]} : vector<8x64xf32> to vector<8x32xf32>
    %164 = vector.shape_cast %163 : vector<8x32xf32> to vector<2x4x32xf32>
    %165 = vector.extract_strided_slice %162 {offsets = [0, 0], sizes = [32, 32], strides = [1, 1]} : vector<32x128xf32> to vector<32x32xf32>
    %166 = vector.shape_cast %165 : vector<32x32xf32> to vector<2x16x32xf32>
    %167 = vector.extract_strided_slice %162 {offsets = [0, 64], sizes = [32, 32], strides = [1, 1]} : vector<32x128xf32> to vector<32x32xf32>
    %168 = vector.shape_cast %167 : vector<32x32xf32> to vector<2x16x32xf32>
    "tpu.trace_start"() <{level = 10 : i32, message = "bqd,bkd->bqk"}> : () -> ()
    %cst_59 = arith.constant dense<0.000000e+00> : vector<2x4x16xf32>
    %169 = tpu.matmul %164, %166, %cst_59 {dimension_numbers = #tpu.dot_dimension_numbers<[2], [2], [1], [1], [0, 0, 0, 1, 1, 1], [0], [0]>} : vector<2x4x32xf32>, vector<2x16x32xf32>, vector<2x4x16xf32> -> vector<2x4x16xf32>
    "tpu.trace_stop"() : () -> ()
    %cst_60 = arith.constant dense<0xFF800000> : vector<2x4xf32>
    %170 = vector.multi_reduction <maximumf>, %169, %cst_60 [2] : vector<2x4x16xf32> to vector<2x4xf32>
    %171 = vector.shape_cast %170 : vector<2x4xf32> to vector<2x4x1xf32>
    %172 = vector.broadcast %171 : vector<2x4x1xf32> to vector<2x4x16xf32>
    %173 = arith.subf %169, %172 : vector<2x4x16xf32>
    %174 = math.exp %173 : vector<2x4x16xf32>
    %cst_61 = arith.constant dense<0.000000e+00> : vector<2x4xf32>
    %175 = vector.multi_reduction <add>, %174, %cst_61 [2] : vector<2x4x16xf32> to vector<2x4xf32>
    %176 = vector.shape_cast %175 : vector<2x4xf32> to vector<2x4x1xf32>
    %177 = tpu.reciprocal %176 {approx = true} : vector<2x4x1xf32> -> vector<2x4x1xf32>
    %178 = vector.broadcast %177 : vector<2x4x1xf32> to vector<2x4x16xf32>
    %179 = arith.mulf %174, %178 : vector<2x4x16xf32>
    "tpu.trace_start"() <{level = 10 : i32, message = "bqk,bkd->bqd"}> : () -> ()
    %cst_62 = arith.constant dense<0.000000e+00> : vector<2x4x32xf32>
    %180 = tpu.matmul %179, %168, %cst_62 {dimension_numbers = #tpu.dot_dimension_numbers<[2], [1], [1], [2], [0, 0, 0, 1, 1, 2], [0], [0]>} : vector<2x4x16xf32>, vector<2x16x32xf32>, vector<2x4x32xf32> -> vector<2x4x32xf32>
    "tpu.trace_stop"() : () -> ()
    %181 = vector.shape_cast %180 : vector<2x4x32xf32> to vector<8x32xf32>
    %182 = vector.extract_strided_slice %160 {offsets = [0, 32], sizes = [8, 32], strides = [1, 1]} : vector<8x64xf32> to vector<8x32xf32>
    %183 = vector.shape_cast %182 : vector<8x32xf32> to vector<2x4x32xf32>
    %184 = vector.extract_strided_slice %162 {offsets = [0, 32], sizes = [32, 32], strides = [1, 1]} : vector<32x128xf32> to vector<32x32xf32>
    %185 = vector.shape_cast %184 : vector<32x32xf32> to vector<2x16x32xf32>
    %186 = vector.extract_strided_slice %162 {offsets = [0, 96], sizes = [32, 32], strides = [1, 1]} : vector<32x128xf32> to vector<32x32xf32>
    %187 = vector.shape_cast %186 : vector<32x32xf32> to vector<2x16x32xf32>
    "tpu.trace_start"() <{level = 10 : i32, message = "bqd,bkd->bqk"}> : () -> ()
    %cst_63 = arith.constant dense<0.000000e+00> : vector<2x4x16xf32>
    %188 = tpu.matmul %183, %185, %cst_63 {dimension_numbers = #tpu.dot_dimension_numbers<[2], [2], [1], [1], [0, 0, 0, 1, 1, 1], [0], [0]>} : vector<2x4x32xf32>, vector<2x16x32xf32>, vector<2x4x16xf32> -> vector<2x4x16xf32>
    "tpu.trace_stop"() : () -> ()
    %cst_64 = arith.constant dense<0xFF800000> : vector<2x4xf32>
    %189 = vector.multi_reduction <maximumf>, %188, %cst_64 [2] : vector<2x4x16xf32> to vector<2x4xf32>
    %190 = vector.shape_cast %189 : vector<2x4xf32> to vector<2x4x1xf32>
    %191 = vector.broadcast %190 : vector<2x4x1xf32> to vector<2x4x16xf32>
    %192 = arith.subf %188, %191 : vector<2x4x16xf32>
    %193 = math.exp %192 : vector<2x4x16xf32>
    %cst_65 = arith.constant dense<0.000000e+00> : vector<2x4xf32>
    %194 = vector.multi_reduction <add>, %193, %cst_65 [2] : vector<2x4x16xf32> to vector<2x4xf32>
    %195 = vector.shape_cast %194 : vector<2x4xf32> to vector<2x4x1xf32>
    %196 = tpu.reciprocal %195 {approx = true} : vector<2x4x1xf32> -> vector<2x4x1xf32>
    %197 = vector.broadcast %196 : vector<2x4x1xf32> to vector<2x4x16xf32>
    %198 = arith.mulf %193, %197 : vector<2x4x16xf32>
    "tpu.trace_start"() <{level = 10 : i32, message = "bqk,bkd->bqd"}> : () -> ()
    %cst_66 = arith.constant dense<0.000000e+00> : vector<2x4x32xf32>
    %199 = tpu.matmul %198, %187, %cst_66 {dimension_numbers = #tpu.dot_dimension_numbers<[2], [1], [1], [2], [0, 0, 0, 1, 1, 2], [0], [0]>} : vector<2x4x16xf32>, vector<2x16x32xf32>, vector<2x4x32xf32> -> vector<2x4x32xf32>
    "tpu.trace_stop"() : () -> ()
    %200 = vector.shape_cast %199 : vector<2x4x32xf32> to vector<8x32xf32>
    %201 = tpu.concatenate %181, %200 in 1 : vector<8x32xf32>, vector<8x32xf32> -> vector<8x64xf32>
    %cst_67 = arith.constant dense<0.000000e+00> : vector<8x64xf32>
    %202 = tpu.matmul %201, %159, %cst_67 {dimension_numbers = #tpu.dot_dimension_numbers<[1], [0], [0], [1], [0, 0, 1, 1], [], []>} : vector<8x64xf32>, vector<64x64xf32>, vector<8x64xf32> -> vector<8x64xf32>
    %203 = vector.broadcast %111 : vector<1x64xf32> to vector<8x64xf32>
    %204 = arith.addf %202, %203 : vector<8x64xf32>
    %c0_68 = arith.constant 0 : index
    %c0_69 = arith.constant 0 : index
    %205 = vector.load %arg11[%c0_68, %c0_69] : memref<8x64xf32, #tpu.memory_space<vmem>>, vector<8x64xf32>
    tpu.vector_store %arg11[%c0_68, %c0_69], %204 {strides = array<i32>} : memref<8x64xf32, #tpu.memory_space<vmem>>, vector<8x64xf32>,
    return
  }
  func.func @transform_0(%arg0: i32) -> (i32, i32) {
    %c0_i32 = arith.constant 0 : i32
    %c0_i32_0 = arith.constant 0 : i32
    %c0_i32_1 = arith.constant 0 : i32
    return %c0_i32, %c0_i32_0 : i32, i32
  }
  func.func @transform_1(%arg0: i32) -> (i32, i32) {
    %c0_i32 = arith.constant 0 : i32
    %c0_i32_0 = arith.constant 0 : i32
    %c0_i32_1 = arith.constant 0 : i32
    return %c0_i32, %c0_i32_0 : i32, i32
  }
  func.func @transform_2(%arg0: i32) -> (i32, i32) {
    %c0_i32 = arith.constant 0 : i32
    %c0_i32_0 = arith.constant 0 : i32
    %c0_i32_1 = arith.constant 0 : i32
    return %c0_i32, %c0_i32_0 : i32, i32
  }
  func.func @transform_3(%arg0: i32) -> (i32, i32, i32) {
    %c0_i32 = arith.constant 0 : i32
    %c0_i32_0 = arith.constant 0 : i32
    %c0_i32_1 = arith.constant 0 : i32
    %c0_i32_2 = arith.constant 0 : i32
    return %c0_i32, %c0_i32_0, %c0_i32_1 : i32, i32, i32
  }
  func.func @transform_4(%arg0: i32) -> (i32, i32) {
    %c0_i32 = arith.constant 0 : i32
    %c0_i32_0 = arith.constant 0 : i32
    %c0_i32_1 = arith.constant 0 : i32
    return %c0_i32, %c0_i32_0 : i32, i32
  }
  func.func @transform_5(%arg0: i32) -> (i32, i32, i32) {
    %c0_i32 = arith.constant 0 : i32
    %c0_i32_0 = arith.constant 0 : i32
    %c0_i32_1 = arith.constant 0 : i32
    %c0_i32_2 = arith.constant 0 : i32
    return %c0_i32, %c0_i32_0, %c0_i32_1 : i32, i32, i32
  }
  func.func @transform_6(%arg0: i32) -> (i32, i32) {
    %c0_i32 = arith.constant 0 : i32
    %c0_i32_0 = arith.constant 0 : i32
    %c0_i32_1 = arith.constant 0 : i32
    return %c0_i32, %c0_i32_0 : i32, i32
  }
  func.func @transform_7(%arg0: i32) -> (i32, i32) {
    %c0_i32 = arith.constant 0 : i32
    %c0_i32_0 = arith.constant 0 : i32
    %c0_i32_1 = arith.constant 0 : i32
    return %c0_i32, %c0_i32_0 : i32, i32
  }
  func.func @transform_8(%arg0: i32) -> (i32, i32, i32) {
    %c0_i32 = arith.constant 0 : i32
    %c0_i32_0 = arith.constant 0 : i32
    %c0_i32_1 = arith.constant 0 : i32
    %c0_i32_2 = arith.constant 0 : i32
    return %c0_i32, %c0_i32_0, %c0_i32_1 : i32, i32, i32
  }
  func.func @transform_9(%arg0: i32) -> (i32, i32) {
    %c0_i32 = arith.constant 0 : i32
    %c0_i32_0 = arith.constant 0 : i32
    %c0_i32_1 = arith.constant 0 : i32
    return %c0_i32, %c0_i32_0 : i32, i32
  }
  func.func @transform_10(%arg0: i32) -> (i32, i32) {
    %c0_i32 = arith.constant 0 : i32
    %c0_i32_0 = arith.constant 0 : i32
    %c0_i32_1 = arith.constant 0 : i32
    return %c0_i32, %c0_i32_0 : i32, i32
  }
}

</mosaic_0001>

<bundles_post_ra>
// kernel: tpu_custom_call.1
= control target key start
LH: loop header
LB: loop body
LE: loop exit
PB: predicated region body
PF: predicated region fallthrough
CT: control target
= control target key end

     0   :  { %15 = vsyncpa [#allocation3], 0  ;;  %s6417_s0 = inlined_call_operand.hbm [shape: f32[8,64], index: 0, kind: input, shape index: {}]   ;;  %s6418_s1 = inlined_call_operand.hbm [shape: f32[64,64], index: 1, kind: input, shape index: {}]   ;;  %s6419_s2 = inlined_call_operand.hbm [shape: f32[32,64], index: 2, kind: input, shape index: {}]   ;;  %s6420_s3 = inlined_call_operand.vmem [shape: f32[8,1,8], index: 3, kind: input, shape index: {}]   ;;  %s6421_s4 = inlined_call_operand.hbm [shape: f32[8,64], index: 4, kind: input, shape index: {}]   ;;  %s6422_s5 = inlined_call_operand.hbm [shape: f32[2,64,64], index: 5, kind: input, shape index: {}]   ;;  %s6423_s6 = inlined_call_operand.hbm [shape: f32[64,128], index: 6, kind: input, shape index: {}]   ;;  %s6424_s7 = inlined_call_operand.vmem [shape: f32[8,64], index: 7, kind: input, shape index: {}]   ;;  %s6425_s8 = inlined_call_operand.hbm [shape: f32[2,64,64], index: 8, kind: input, shape index: {}]   ;;  %s6426_s9 = inlined_call_operand.hbm [shape: f32[64,128], index: 9, kind: input, shape index: {}]   ;;  %s6427_s10 = inlined_call_operand.hbm [shape: f32[8,64], index: 10, kind: output, shape index: {}]  }
   0x1   :  { %16 = vsyncpa [#allocation6], 0 }
   0x2   :  { %17 = vsyncpa [#allocation9], 0 }
   0x3   :  { %18 = vsyncpa [#allocation12], 0 }
   0x4   :  { %19 = vsyncpa [#allocation15], 0 }
   0x5   :  { %20 = vsyncpa [#allocation4], 0  ;;  %s5507_s13 = smov [#allocation5]   ;;  %s5297_s17 = scalar_lea.hbm %s6418_s1, 1024 }
   0x6   :  { %s36_s14 = sshll.u32 %s5507_s13, 4  ;;  %p5298_p0 = scmp.ne.s32.totalorder %s6418_s1, %s5297_s17  ;;  %s37_s14 = int_to_ptr.vmem [resolvable:$true] %s36_s14 }
   0x7   :  { %p5301_p1 = scmp.lt.u32.totalorder %s5297_s17, %s6418_s1 }
   0x9   :  { %p5303_p2 = pnand %p5301_p1, %p5298_p0 }
   0xb   :  { %5306 = shalt.err (!%p5303_p2)
}
   0xc   :  { %s5307_s22 = scalar_lea.vmem %s37_s14, 1024  ;;  %p5312_p4 = scmp.lt.s32.totalorder %s37_s14, %s37_s14 }
   0xd   :  { %p5308_p3 = scmp.ne.s32.totalorder %s37_s14, %s5307_s22  ;;  %p5313_p5 = scmp.lt.s32.totalorder %s5307_s22, %s5307_s22 }
   0xf   :  { %p5314_p6 = por %p5313_p5, %p5312_p4 }
  0x11   :  { %p5315_p7 = pnand %p5314_p6, %p5308_p3 }
  0x13   :  { %5318 = shalt.err (!%p5315_p7)
}
  0x14   :  { %s5508_s23 = smov 128   ;;  %s5509_s24 = smov 8  }
  0x15   :  { %42 = dma.hbm_to_vmem [thread:$0]  %s6418_s1, 1024, %s37_s14, [#allocation6], %s5508_s23, %s5508_s23, %s5509_s24  }
  0x16   :  { %s5510_s27 = smov [#allocation8]   ;;  %s5511_s29 = smov [#allocation11]  }
  0x17   :  { %s63_s28 = sshll.u32 %s5510_s27, 4  ;;  %s84_s30 = sshll.u32 %s5511_s29, 4  ;;  %s64_s28 = int_to_ptr.vmem [resolvable:$true] %s63_s28  ;;  %s85_s30 = int_to_ptr.vmem [resolvable:$true] %s84_s30 }
  0x18   :  { %s5319_s13 = scalar_lea.hbm %s6421_s4, 128 }
  0x19   :  { %p5320_p8 = scmp.ne.s32.totalorder %s6421_s4, %s5319_s13  ;;  %p5323_p9 = scmp.lt.u32.totalorder %s5319_s13, %s6421_s4 }
  0x1b   :  { %p5325_p10 = pnand %p5323_p9, %p5320_p8 }
  0x1d   :  { %5328 = shalt.err (!%p5325_p10)
}
  0x1e   :  { %s5329_s1 = scalar_lea.vmem %s64_s28, 128  ;;  %p5334_p12 = scmp.lt.s32.totalorder %s64_s28, %s64_s28 }
  0x1f   :  { %p5330_p11 = scmp.ne.s32.totalorder %s64_s28, %s5329_s1  ;;  %p5335_p13 = scmp.lt.s32.totalorder %s5329_s1, %s5329_s1 }
  0x21   :  { %p5336_p0 = por %p5335_p13, %p5334_p12 }
  0x23   :  { %p5337_p1 = pnand %p5336_p0, %p5330_p11 }
  0x25   :  { %5340 = shalt.err (!%p5337_p1)
}
  0x26   :  { %66 = dma.hbm_to_vmem [thread:$0]  %s6421_s4, 128, %s64_s28, [#allocation9]  }
  0x27   :  { %s5341_s22 = scalar_lea.hbm %s6423_s6, 1024 }
  0x28   :  { %p5342_p2 = scmp.ne.s32.totalorder %s6423_s6, %s5341_s22  ;;  %p5345_p3 = scmp.lt.u32.totalorder %s5341_s22, %s6423_s6 }
  0x2a   :  { %p5347_p4 = pnand %p5345_p3, %p5342_p2 }
  0x2c   :  { %5350 = shalt.err (!%p5347_p4)
}
  0x2d   :  { %s5351_s11 = scalar_lea.vmem %s85_s30, 1024  ;;  %p5356_p6 = scmp.lt.s32.totalorder %s85_s30, %s85_s30 }
  0x2e   :  { %p5352_p5 = scmp.ne.s32.totalorder %s85_s30, %s5351_s11  ;;  %p5357_p7 = scmp.lt.s32.totalorder %s5351_s11, %s5351_s11 }
  0x30   :  { %p5358_p8 = por %p5357_p7, %p5356_p6 }
  0x32   :  { %p5359_p9 = pnand %p5358_p8, %p5352_p5 }
  0x34   :  { %5362 = shalt.err (!%p5359_p9)
}
  0x35   :  { %90 = dma.hbm_to_vmem [thread:$0]  %s6423_s6, 1024, %s85_s30, [#allocation12], %s5508_s23, %s5508_s23, %s5509_s24  }
  0x36   :  { %s5512_s12 = smov [#allocation2]   ;;  %s5513_s15 = smov [#allocation7]  }
  0x37   :  { %s27_s13 = sshll.u32 %s5512_s12, 4  ;;  %s48_s16 = sshll.u32 %s5513_s15, 4  ;;  %s28_s13 = int_to_ptr.vmem [resolvable:$true] %s27_s13  ;;  %s49_s16 = int_to_ptr.vmem [resolvable:$true] %s48_s16 }
  0x38   :  { %s5363_s1 = scalar_lea.hbm %s6417_s0, 128 }
  0x39   :  { %p5364_p10 = scmp.ne.s32.totalorder %s6417_s0, %s5363_s1  ;;  %p5367_p11 = scmp.lt.u32.totalorder %s5363_s1, %s6417_s0 }
  0x3b   :  { %p5369_p12 = pnand %p5367_p11, %p5364_p10 }
  0x3d   :  { %5372 = shalt.err (!%p5369_p12)
}
  0x3e   :  { %s5373_s6 = scalar_lea.vmem %s28_s13, 128  ;;  %p5378_p0 = scmp.lt.s32.totalorder %s28_s13, %s28_s13 }
  0x3f   :  { %p5374_p13 = scmp.ne.s32.totalorder %s28_s13, %s5373_s6  ;;  %p5379_p1 = scmp.lt.s32.totalorder %s5373_s6, %s5373_s6 }
  0x41   :  { %p5380_p2 = por %p5379_p1, %p5378_p0 }
  0x43   :  { %p5381_p3 = pnand %p5380_p2, %p5374_p13 }
  0x45   :  { %5384 = shalt.err (!%p5381_p3)
}
  0x46   :  { %30 = dma.hbm_to_vmem [thread:$0]  %s6417_s0, 128, %s28_s13, [#allocation3]  }
  0x47   :  { %s5385_s27 = scalar_lea.hbm %s6419_s2, 512 }
  0x48   :  { %p5386_p4 = scmp.ne.s32.totalorder %s6419_s2, %s5385_s27  ;;  %p5389_p5 = scmp.lt.u32.totalorder %s5385_s27, %s6419_s2 }
  0x4a   :  { %p5391_p6 = pnand %p5389_p5, %p5386_p4 }
  0x4c   :  { %5394 = shalt.err (!%p5391_p6)
}
  0x4d   :  { %s5395_s12 = scalar_lea.vmem %s49_s16, 512  ;;  %p5400_p8 = scmp.lt.s32.totalorder %s49_s16, %s49_s16 }
  0x4e   :  { %p5396_p7 = scmp.ne.s32.totalorder %s49_s16, %s5395_s12  ;;  %p5401_p9 = scmp.lt.s32.totalorder %s5395_s12, %s5395_s12 }
  0x50   :  { %p5402_p10 = por %p5401_p9, %p5400_p8 }
  0x52   :  { %p5403_p11 = pnand %p5402_p10, %p5396_p7 }
  0x54   :  { %5406 = shalt.err (!%p5403_p11)
}
  0x55   :  { %54 = dma.hbm_to_vmem [thread:$0]  %s6419_s2, 512, %s49_s16, [#allocation6], %s5508_s23, %s5508_s23, %s5509_s24  }
  0x56   :  { %s5514_s15 = smov [#allocation10]   ;;  %s5515_s18 = smov [#allocation13]  }
  0x57   :  { %s72_s17 = sshll.u32 %s5514_s15, 4  ;;  %s98_s1 = sshll.u32 %s5515_s18, 4  ;;  %s73_s17 = int_to_ptr.vmem [resolvable:$true] %s72_s17  ;;  %s99_s1 = int_to_ptr.vmem [resolvable:$true] %s98_s1 }
  0x58   :  { %s5407_s20 = scalar_lea.hbm %s6422_s5, 2048 }
  0x59   :  { %p5408_p12 = scmp.ne.s32.totalorder %s6422_s5, %s5407_s20  ;;  %p5411_p13 = scmp.lt.u32.totalorder %s5407_s20, %s6422_s5 }
  0x5b   :  { %p5413_p0 = pnand %p5411_p13, %p5408_p12 }
  0x5d   :  { %5416 = shalt.err (!%p5413_p0)
}
  0x5e   :  { %s5417_s2 = scalar_lea.vmem %s73_s17, 2048  ;;  %p5422_p2 = scmp.lt.s32.totalorder %s73_s17, %s73_s17 }
  0x5f   :  { %p5418_p1 = scmp.ne.s32.totalorder %s73_s17, %s5417_s2  ;;  %p5423_p3 = scmp.lt.s32.totalorder %s5417_s2, %s5417_s2 }
  0x61   :  { %p5424_p4 = por %p5423_p3, %p5422_p2 }
  0x63   :  { %p5425_p5 = pnand %p5424_p4, %p5418_p1 }
  0x65   :  { %5428 = shalt.err (!%p5425_p5)
}
  0x66   :  { %78 = dma.hbm_to_vmem [thread:$0]  %s6422_s5, 2048, %s73_s17, [#allocation9], %s5508_s23, %s5508_s23, %s5509_s24  }
  0x67   :  { %s5429_s29 = scalar_lea.hbm %s6425_s8, 2048 }
  0x68   :  { %p5430_p6 = scmp.ne.s32.totalorder %s6425_s8, %s5429_s29  ;;  %p5433_p7 = scmp.lt.u32.totalorder %s5429_s29, %s6425_s8 }
  0x6a   :  { %p5435_p8 = pnand %p5433_p7, %p5430_p6 }
  0x6c   :  { %5438 = shalt.err (!%p5435_p8)
}
  0x6d   :  { %s5439_s0 = scalar_lea.vmem %s99_s1, 2048  ;;  %p5444_p10 = scmp.lt.s32.totalorder %s99_s1, %s99_s1 }
  0x6e   :  { %p5440_p9 = scmp.ne.s32.totalorder %s99_s1, %s5439_s0  ;;  %p5445_p11 = scmp.lt.s32.totalorder %s5439_s0, %s5439_s0 }
  0x70   :  { %p5446_p12 = por %p5445_p11, %p5444_p10 }
  0x72   :  { %p5447_p13 = pnand %p5446_p12, %p5440_p9 }
  0x74   :  { %5450 = shalt.err (!%p5447_p13)
}
  0x75   :  { %104 = dma.hbm_to_vmem [thread:$0]  %s6425_s8, 2048, %s99_s1, [#allocation12], %s5508_s23, %s5508_s23, %s5509_s24  }
  0x76   :  { %s5516_s15 = smov [#allocation14]   ;;  %s5451_s19 = scalar_lea.hbm %s6426_s9, 1024 }
  0x77   :  { %s110_s17 = sshll.u32 %s5516_s15, 4  ;;  %p5452_p0 = scmp.ne.s32.totalorder %s6426_s9, %s5451_s19  ;;  %s111_s17 = int_to_ptr.vmem [resolvable:$true] %s110_s17 }
  0x78   :  { %p5455_p1 = scmp.lt.u32.totalorder %s5451_s19, %s6426_s9 }
  0x7a   :  { %p5457_p2 = pnand %p5455_p1, %p5452_p0 }
  0x7c   :  { %5460 = shalt.err (!%p5457_p2)
}
  0x7d   :  { %s5461_s22 = scalar_lea.vmem %s111_s17, 1024  ;;  %p5466_p4 = scmp.lt.s32.totalorder %s111_s17, %s111_s17 }
  0x7e   :  { %p5462_p3 = scmp.ne.s32.totalorder %s111_s17, %s5461_s22  ;;  %p5467_p5 = scmp.lt.s32.totalorder %s5461_s22, %s5461_s22 }
  0x80   :  { %p5468_p6 = por %p5467_p5, %p5466_p4 }
  0x82   :  { %p5469_p7 = pnand %p5468_p6, %p5462_p3 }
  0x84   :  { %5472 = shalt.err (!%p5469_p7)
}
  0x85   :  { %116 = dma.hbm_to_vmem [thread:$0]  %s6426_s9, 1024, %s111_s17, [#allocation15], %s5508_s23, %s5508_s23, %s5509_s24  }
  0x86   :  { %5495 = dma.done.wait [#allocation3], 128  }
  0x87   :  { %5496 = vsyncadd [#allocation3], 4294967168 }
  0x88   :  { %5497 = dma.done.wait [#allocation6], 1536  }
  0x89   :  { %5498 = vsyncadd [#allocation6], 4294965760 }
  0x8a   :  { %5499 = dma.done.wait [#allocation9], 2176  }
  0x8b   :  { %5500 = vsyncadd [#allocation9], 4294965120 }
  0x8c   :  { %5501 = dma.done.wait [#allocation12], 3072  }
  0x8d   :  { %5502 = vsyncadd [#allocation12], 4294964224 }
  0x8e   :  { %5503 = dma.done.wait [#allocation15], 1024  }
  0x8f   :  { %5504 = vsyncadd [#allocation15], 4294966272  ;;  %vm163_vm0 = vcmask 523264   ;;  %v142_v0 = vld [vmem:[#allocation5] sm:$0xff]  ;;  %v143_v1 = vld [vmem:[#allocation5 + $0x8] sm:$0xff]  ;;  %vm5518_vm1 = vmmov 0  }
  0x90   :  { %v141_v2 = vld [vmem:[#allocation2] sm:$0xff]  ;;  %v188_v3 = vsel %vm163_vm0, %v142_v0, 0.0  ;;  %v191_v4 = vsel %vm163_vm0, %v143_v1, 0.0  ;;  %v144_v5 = vld [vmem:[#allocation5 + $0x10] sm:$0xff]  ;;  %v146_v9 = vld [vmem:[#allocation5 + $0x20] sm:$0xff]  ;;  %vm593_vm2 = vcmask 261120  }
  0x91   :  { %189 = vadd.xlane.f32.xlu0 %v188_v3  ;;  %192 = vadd.xlane.f32.xlu1 %v191_v4  ;;  %v164_v6 = vsel %vm163_vm0, %v141_v2, 0.0  ;;  %v194_v7 = vsel %vm163_vm0, %v144_v5, 0.0  ;;  %v145_v8 = vld [vmem:[#allocation5 + $0x18] sm:$0xff]  ;;  %v200_v11 = vsel %vm163_vm0, %v146_v9, 0.0  ;;  %v147_v12 = vld [vmem:[#allocation5 + $0x28] sm:$0xff]  ;;  %v148_v13 = vld [vmem:[#allocation5 + $0x30] sm:$0xff] }
  0x92   :  { %v197_v10 = vsel %vm163_vm0, %v145_v8, 0.0  ;;  %v203_v14 = vsel %vm163_vm0, %v147_v12, 0.0  ;;  %v206_v15 = vsel %vm163_vm0, %v148_v13, 0.0  ;;  %v149_v16 = vld [vmem:[#allocation5 + $0x38] sm:$0xff]  ;;  %v406_v63 = vld [vmem:[#allocation11] sm:$0xff]  ;;  %v317_v3 = vld [vmem:[#allocation10 + $0x8] sm:$0xff] }
  0x93   :  { %v209_v17 = vsel %vm163_vm0, %v149_v16, 0.0  ;;  %s5521_s9 = smov 64   ;;  %s5522_s23 = smov 96   ;;  %vm1194_vm3 = vcmask 57344   ;;  %vm1286_vm4 = vcmask 64512   ;;  %vm3253_vm5 = vcmask 1041409   ;;  %vm6319_vm12 = vmpackc.low %vm593_vm2, %vm593_vm2 }
  0x94   :  { %vm3256_vm6 = vcmask 1042434   ;;  %vm3259_vm7 = vcmask 1043459   ;;  %vm3262_vm8 = vcmask 1044484   ;;  %vm3265_vm9 = vcmask 1045509  }
  0x95   :  { %165 = vadd.xlane.f32.xlu0 %v164_v6  ;;  %195 = vadd.xlane.f32.xlu1 %v194_v7  ;;  %v408_v6 = vld [vmem:[#allocation11 + $0x10] sm:$0xff]  ;;  %v409_v7 = vld [vmem:[#allocation11 + $0x18] sm:$0xff]  ;;  %vm3268_vm10 = vcmask 1046534   ;;  %vm3271_vm11 = vcmask 1047559   ;;  %vm3823_vm13 = vcmask 125952   ;;  %vm3852_vm14 = vcmask 130048  }
  0x99   :  { %198 = vadd.xlane.f32.xlu0 %v197_v10  ;;  %201 = vadd.xlane.f32.xlu1 %v200_v11  ;;  %v319_v10 = vld [vmem:[#allocation10 + $0x18] sm:$0xff] }
  0x9d   :  { %204 = vadd.xlane.f32.xlu0 %v203_v14  ;;  %207 = vadd.xlane.f32.xlu1 %v206_v15  ;;  %v320_v15 = vld [vmem:[#allocation10 + $0x20] sm:$0xff] }
  0xa1   :  { %210 = vadd.xlane.f32.xlu0 %v209_v17 }
 0x11e   :  { %v190_v18 = vpop.xlane.xlu0 %189  ;;  %v193_v19 = vpop.xlane.xlu1 %192 }
 0x11f   :  { %v212_v20 = vmul.f32 0.015625, %v190_v18  ;;  %v213_v21 = vmul.f32 0.015625, %v193_v19  ;;  %v412_v18 = vld [vmem:[#allocation11 + $0x30] sm:$0xff]  ;;  %v413_v19 = vld [vmem:[#allocation11 + $0x38] sm:$0xff] }
 0x121   :  { %v5703_v22 = vsub.f32 %v142_v0, %v212_v20  ;;  %v5705_v23 = vsub.f32 %v143_v1, %v213_v21  ;;  %v407_v0 = vld [vmem:[#allocation11 + $0x8] sm:$0xff]  ;;  %v5055_v20 = vpack.c.bf16 %v413_v19, %v412_v18  ;;  %v322_v21 = vld [vmem:[#allocation10 + $0x30] sm:$0xff] }
 0x122   :  { %v166_v24 = vpop.xlane.xlu0 %165  ;;  %v196_v25 = vpop.xlane.xlu1 %195  ;;  %v5043_v1 = vpack.c.bf16 %v407_v0, %v406_v63 }
 0x123   :  { %v168_v26 = vmul.f32 0.015625, %v166_v24  ;;  %v214_v27 = vmul.f32 0.015625, %v196_v25  ;;  %v228_v28 = vmul.f32 %v5703_v22, %v5703_v22  ;;  %v229_v29 = vmul.f32 %v5705_v23, %v5705_v23  ;;  %v323_v24 = vld [vmem:[#allocation10 + $0x38] sm:$0xff] }
 0x124   :  { %5044 = vmatprep.subr.bf16.mxu1 %v5043_v1  ;;  %v5041_v25 = vpack.c.bf16 %v323_v24, %v322_v21 }
 0x125   :  { %v5711_v30 = vsub.f32 %v141_v2, %v168_v26  ;;  %v5713_v31 = vsub.f32 %v144_v5, %v214_v27  ;;  %v236_v32 = vsel %vm163_vm0, %v228_v28, 0.0  ;;  %v239_v35 = vsel %vm163_vm0, %v229_v29, 0.0  ;;  %v316_v2 = vld [vmem:[#allocation10] sm:$0xff]  ;;  %5046 = vmatpush3.bf16.msra.mxu1 %v5043_v1 }
 0x126   :  { %237 = vadd.xlane.f32.xlu1 %v236_v32  ;;  %v199_v33 = vpop.xlane.xlu0 %198  ;;  %v202_v34 = vpop.xlane.xlu1 %201  ;;  %v5032_v4 = vpack.c.bf16 %v317_v3, %v316_v2  ;;  %v5517_v5 = vmov 0.0|0.0   ;;  %v5519_v26 = vmov 0.0   ;;  %v178_v29 = vlaneseq }
 0x127   :  { %v215_v36 = vmul.f32 0.015625, %v199_v33  ;;  %v216_v37 = vmul.f32 0.015625, %v202_v34  ;;  %v170_v38 = vmul.f32 %v5711_v30, %v5711_v30  ;;  %v230_v39 = vmul.f32 %v5713_v31, %v5713_v31  ;;  %5031 = vmatprep.subr.bf16.mxu0 %v5517_v5  ;;  %4705 = vmatprep.mubr.msk.f32.mxu0 %vm5518_vm1, %v5519_v26 }
 0x128   :  { %5033 = vmatpush3.bf16.msra.mxu0 %v5032_v4 }
 0x129   :  { %v5721_v40 = vsub.f32 %v145_v8, %v215_v36  ;;  %v5723_v41 = vsub.f32 %v146_v9, %v216_v37  ;;  %v171_v42 = vsel %vm163_vm0, %v170_v38, 0.0  ;;  %v242_v45 = vsel %vm163_vm0, %v230_v39, 0.0  ;;  %5034 = vmatprep.subr.bf16.mxu0 %v5517_v5  ;;  %v318_v9 = vld [vmem:[#allocation10 + $0x10] sm:$0xff] }
 0x12a   :  { %240 = vadd.xlane.f32.xlu1 %v239_v35  ;;  %172 = vadd.xlane.f32.xlu0 %v171_v42  ;;  %v205_v43 = vpop.xlane.xlu0 %204  ;;  %v208_v44 = vpop.xlane.xlu1 %207  ;;  %v5047_v8 = vpack.c.bf16 %v409_v7, %v408_v6  ;;  %v5035_v11 = vpack.c.bf16 %v319_v10, %v318_v9  ;;  %v5756_v37 = vshrl.u32 %v178_v29, 7 }
 0x12b   :  { %v217_v46 = vmul.f32 0.015625, %v205_v43  ;;  %v218_v47 = vmul.f32 0.015625, %v208_v44  ;;  %v231_v48 = vmul.f32 %v5721_v40, %v5721_v40  ;;  %v232_v49 = vmul.f32 %v5723_v41, %v5723_v41 }
 0x12c   :  { %5048 = vmatprep.subr.bf16.mxu1 %v5047_v8  ;;  %5036 = vmatpush3.bf16.msra.mxu0 %v5035_v11  ;;  %v185_v6 = vsub.s32 1, %v5756_v37 }
 0x12d   :  { %v5731_v50 = vsub.f32 %v147_v12, %v217_v46  ;;  %v5733_v51 = vsub.f32 %v148_v13, %v218_v47  ;;  %v245_v52 = vsel %vm163_vm0, %v231_v48, 0.0  ;;  %v248_v55 = vsel %vm163_vm0, %v232_v49, 0.0  ;;  %5050 = vmatpush3.bf16.msra.mxu1 %v5047_v8  ;;  %v410_v12 = vld [vmem:[#allocation11 + $0x20] sm:$0xff]  ;;  %v411_v13 = vld [vmem:[#allocation11 + $0x28] sm:$0xff]  ;;  %5037 = vmatprep.subr.bf16.mxu0 %v5517_v5  ;;  %v162_v49 = vld [vmem:[#allocation8] sm:$0xff] }
 0x12e   :  { %243 = vadd.xlane.f32.xlu0 %v242_v45  ;;  %246 = vadd.xlane.f32.xlu1 %v245_v52  ;;  %v211_v53 = vpop.xlane.xlu0 %210  ;;  %v5051_v14 = vpack.c.bf16 %v411_v13, %v410_v12  ;;  %v294_v46 = vsub.s32 2, %v5756_v37 }
 0x12f   :  { %v219_v54 = vmul.f32 0.015625, %v211_v53  ;;  %v233_v56 = vmul.f32 %v5731_v50, %v5731_v50  ;;  %v234_v57 = vmul.f32 %v5733_v51, %v5733_v51 }
 0x130   :  { %5052 = vmatprep.subr.bf16.mxu1 %v5051_v14 }
 0x131   :  { %v5741_v58 = vsub.f32 %v149_v16, %v219_v54  ;;  %v251_v59 = vsel %vm163_vm0, %v233_v56, 0.0  ;;  %v254_v60 = vsel %vm163_vm0, %v234_v57, 0.0  ;;  %v321_v16 = vld [vmem:[#allocation10 + $0x28] sm:$0xff]  ;;  %5054 = vmatpush3.bf16.msra.mxu1 %v5051_v14  ;;  %v306_v54 = vsub.s32 3, %v5756_v37 }
 0x132   :  { %249 = vadd.xlane.f32.xlu0 %v248_v55  ;;  %252 = vadd.xlane.f32.xlu1 %v251_v59  ;;  %v5038_v17 = vpack.c.bf16 %v321_v16, %v320_v15  ;;  %v295_v57 = vrot.slane %v162_v49, %v294_v46  ;;  %v186_v15 = vrot.slane %v162_v49, %v185_v6 }
 0x133   :  { %v235_v61 = vmul.f32 %v5741_v58, %v5741_v58  ;;  %5056 = vmatprep.subr.bf16.mxu1 %v5055_v20  ;;  %v307_v2 = vrot.slane %v162_v49, %v306_v54 }
 0x134   :  { %5039 = vmatpush3.bf16.msra.mxu0 %v5038_v17 }
 0x135   :  { %v257_v62 = vsel %vm163_vm0, %v235_v61, 0.0  ;;  %5040 = vmatprep.subr.bf16.mxu0 %v5517_v5  ;;  %5058 = vmatpush3.bf16.msra.mxu1 %v5055_v20 }
 0x136   :  { %255 = vadd.xlane.f32.xlu0 %v254_v60  ;;  %258 = vadd.xlane.f32.xlu1 %v257_v62  ;;  %v5763_v62 = vsub.s32 0, %v5756_v37 }
 0x137   :  { %4756 = vmatprep.subr.mxu1 %v5519_v26 }
 0x138   :  { %5042 = vmatpush3.bf16.msra.mxu0 %v5041_v25  ;;  %v181_v11 = vrot.slane %v162_v49, %v5763_v62 }
 0x139   :  { %4736 = vmatprep.subr.mxu0 %v5519_v26 }
 0x1b3   :  { %v238_v27 = vpop.xlane.xlu1 %237 }
 0x1b4   :  { %v260_v28 = vmul.f32 0.015625, %v238_v27 }
 0x1b6   :  { %v268_v32 = vadd.f32 1e-06, %v260_v28 }
 0x1b7   :  { %v241_v33 = vpop.xlane.xlu1 %240  ;;  %v173_v34 = vpop.xlane.xlu0 %172 }
 0x1b8   :  { %5187 = vrsqrt.f32 %v268_v32  ;;  %v261_v35 = vmul.f32 0.015625, %v241_v33  ;;  %v174_v36 = vmul.f32 0.015625, %v173_v34 }
 0x1ba   :  { %v269_v38 = vadd.f32 1e-06, %v261_v35  ;;  %v175_v39 = vadd.f32 1e-06, %v174_v36 }
 0x1bb   :  { %v247_v42 = vpop.xlane.xlu1 %246  ;;  %v244_v43 = vpop.xlane.xlu0 %243 }
 0x1bc   :  { %5189 = vrsqrt.f32 %v269_v38  ;;  %v263_v44 = vmul.f32 0.015625, %v247_v42  ;;  %v262_v45 = vmul.f32 0.015625, %v244_v43 }
 0x1bd   :  { %5191 = vrsqrt.f32 %v175_v39 }
 0x1be   :  { %v271_v47 = vadd.f32 1e-06, %v263_v44  ;;  %v270_v48 = vadd.f32 1e-06, %v262_v45 }
 0x1bf   :  { %v253_v52 = vpop.xlane.xlu1 %252  ;;  %v250_v53 = vpop.xlane.xlu0 %249 }
 0x1c0   :  { %5193 = vrsqrt.f32 %v271_v47  ;;  %v265_v55 = vmul.f32 0.015625, %v253_v52  ;;  %v264_v56 = vmul.f32 0.015625, %v250_v53  ;;  %v5520_v47 = vmov 1966171168  }
 0x1c1   :  { %5195 = vrsqrt.f32 %v270_v48 }
 0x1c2   :  { %v5188_v59 = vpop.eup %5187  ;;  %v273_v60 = vadd.f32 1e-06, %v265_v55  ;;  %v272_v61 = vadd.f32 1e-06, %v264_v56 }
 0x1c3   :  { %v259_v63 = vpop.xlane.xlu1 %258  ;;  %v256_v0 = vpop.xlane.xlu0 %255  ;;  %v284_v1 = vmul.f32 %v5188_v59, %v5703_v22 }
 0x1c4   :  { %5197 = vrsqrt.f32 %v273_v60  ;;  %v267_v3 = vmul.f32 0.015625, %v259_v63  ;;  %v266_v4 = vmul.f32 0.015625, %v256_v0 }
 0x1c5   :  { %5199 = vrsqrt.f32 %v272_v61  ;;  %v296_v7 = vmul.f32 %v295_v57, %v284_v1 }
 0x1c6   :  { %v5190_v8 = vpop.eup %5189  ;;  %v275_v9 = vadd.f32 1e-06, %v267_v3  ;;  %v274_v10 = vadd.f32 1e-06, %v266_v4 }
 0x1c7   :  { %v5192_v12 = vpop.eup %5191  ;;  %v308_v13 = vadd.f32 %v307_v2, %v296_v7  ;;  %v285_v14 = vmul.f32 %v5190_v8, %v5705_v23 }
 0x1c8   :  { %5201 = vrsqrt.f32 %v275_v9  ;;  %v177_v22 = vmul.f32 %v5192_v12, %v5711_v30 }
 0x1c9   :  { %5203 = vrsqrt.f32 %v274_v10  ;;  %4724 = vmatprep.mubr.msk.f32.mxu1 %vm163_vm0, %v308_v13  ;;  %v297_v16 = vmul.f32 %v295_v57, %v285_v14 }
 0x1ca   :  { %v5194_v17 = vpop.eup %5193  ;;  %v182_v18 = vmul.f32 %v181_v11, %v177_v22 }
 0x1cb   :  { %v5196_v19 = vpop.eup %5195  ;;  %v309_v20 = vadd.f32 %v307_v2, %v297_v16  ;;  %v287_v21 = vmul.f32 %v5194_v17, %v5721_v40 }
 0x1cc   :  { %v187_v24 = vadd.f32 %v186_v15, %v182_v18  ;;  %v286_v25 = vmul.f32 %v5196_v19, %v5713_v31  ;;  %v5909_v18 = vld [vmem:[%s6420_s3] sm:$0x1] }
 0x1cd   :  { %4725 = vmatmul.mubr.msk.f32.vlgmr.msra.gmra.mrb[0].mxu1 %vm163_vm0, %v309_v20  ;;  %v299_v23 = vmul.f32 %v295_v57, %v287_v21 }
 0x1ce   :  { %v5198_v30 = vpop.eup %5197  ;;  %4706 = vmatmul.mubr.msk.f32.vlgmr.msra.gmra.mrb[0].mxu0 %vm163_vm0, %v187_v24  ;;  %v298_v27 = vmul.f32 %v295_v57, %v286_v25  ;;  %v5915_v24 = vld [vmem:[%s6420_s3 + $0x1] sm:$0x1] }
 0x1cf   :  { %v5200_v28 = vpop.eup %5199  ;;  %v311_v29 = vadd.f32 %v307_v2, %v299_v23  ;;  %v289_v32 = vmul.f32 %v5198_v30, %v5731_v50  ;;  %4738 = vmatprep.mubr.msk.f32.mxu0 %vm5518_vm1, %v5519_v26 }
 0x1d0   :  { %v310_v33 = vadd.f32 %v307_v2, %v298_v27  ;;  %v288_v40 = vmul.f32 %v5200_v28, %v5723_v41  ;;  %v5922_v28 = vld [vmem:[%s6420_s3 + $0x2] sm:$0x1] }
 0x1d1   :  { %v301_v34 = vmul.f32 %v295_v57, %v289_v32 }
 0x1d2   :  { %v5202_v35 = vpop.eup %5201  ;;  %4727 = vmatprep.mubr.msk.f32.mxu1 %vm163_vm0, %v310_v33  ;;  %v300_v31 = vmul.f32 %v295_v57, %v288_v40  ;;  %v5928_v33 = vld [vmem:[%s6420_s3 + $0x4] sm:$0x1] }
 0x1d3   :  { %v5204_v36 = vpop.eup %5203  ;;  %4728 = vmatmul.mubr.msk.f32.gmra.mrb[2].mxu1 %vm163_vm0, %v311_v29  ;;  %v313_v38 = vadd.f32 %v307_v2, %v301_v34  ;;  %v291_v39 = vmul.f32 %v5202_v35, %v5741_v58  ;;  %v546_v58 = vunpack.c.l.s4 %v5520_v47 }
 0x1d4   :  { %v312_v42 = vadd.f32 %v307_v2, %v300_v31  ;;  %v290_v50 = vmul.f32 %v5204_v36, %v5733_v51  ;;  %v5934_v31 = vld [vmem:[%s6420_s3 + $0x3] sm:$0x1] }
 0x1d5   :  { %v303_v43 = vmul.f32 %v295_v57, %v291_v39  ;;  %v547_v48 = vunpack.c.0.s8 %v546_v58 }
 0x1d6   :  { %4730 = vmatprep.mubr.msk.f32.mxu1 %vm163_vm0, %v312_v42  ;;  %v302_v44 = vmul.f32 %v295_v57, %v290_v50  ;;  %v5941_v50 = vld [vmem:[%s6420_s3 + $0x6] sm:$0x1] }
 0x1d7   :  { %4731 = vmatmul.mubr.msk.f32.gmra.mrb[4].mxu1 %vm163_vm0, %v313_v38  ;;  %v315_v41 = vadd.f32 %v307_v2, %v303_v43  ;;  %v550_v51 = vsub.s32 %v547_v48, %v5756_v37 }
 0x1d8   :  { %v314_v45 = vadd.f32 %v307_v2, %v302_v44 }
 0x1da   :  { %4733 = vmatprep.mubr.msk.f32.mxu1 %vm163_vm0, %v314_v45 }
 0x1db   :  { %4734 = vmatmul.mubr.msk.f32.gmra.mrb[6].mxu1 %vm163_vm0, %v315_v41 }
 0x1dc   :  { %4758 = vmatprep.mubr.msk.f32.mxu1 %vm5518_vm1, %v5519_v26 }
 0x2a0   :  { %v5794_v49 = vpop.f32.mrb[0].mxu1 }
 0x2a1   :  { %v402_v52 = vpop.f32.mrb[0].mxu0  ;;  %v5796_v53 = vpop.f32.mrb[1].mxu1  ;;  %1360 = vrot.lane.b32.xlu1 %v5794_v49, %s5521_s9 }
 0x2a2   :  { %v551_v55 = vrot.slane %v402_v52, %v550_v51  ;;  %v4707_v56 = vpop.f32.mrb[1].mxu0  ;;  %1283 = vrot.lane.b32.xlu0 %v5796_v53, %s5521_s9  ;;  %4737 = vmatpush3.xpose.msk.msra.mxu0 %vm593_vm2, %v5796_v53  ;;  %v544_v60 = vcombine.high %v402_v52, %v402_v52 }
 0x2a3   :  { %4741 = vmatprep.subr.mxu0 %v5519_v26 }
 0x2a4   :  { %v559_v57 = vcombine.high %v551_v55, %v551_v55  ;;  %v567_v59 = vrot.slane %v551_v55, %v550_v51  ;;  %v558_v2 = vrot.slane %v544_v60, %v550_v51 }
 0x2a5   :  { %1980 = vrot.lane.b32.xlu1 %v5794_v49, %s5522_s23 }
 0x2a6   :  { %v5807_v61 = vpop.f32.mrb[2].mxu1  ;;  %4739 = vmatmul.mubr.msk.f32.vlgmr.msra.gmra.mrb[2].mxu0 %vm593_vm2, %v567_v59  ;;  %1898 = vrot.lane.b32.xlu0 %v5796_v53, %s5522_s23  ;;  %v581_v0 = vrot.slane %v559_v57, %v550_v51  ;;  %v1895_v1 = vrot.slane %v567_v59, %v5763_v62  ;;  %v5830_v7 = vcombine.high %v567_v59, %v567_v59  ;;  %v5961_v59 = vld [vmem:[%s6420_s3 + $0x5] sm:$0x1] }
 0x2a7   :  { %v5812_v63 = vpop.f32.mrb[3].mxu1  ;;  %4742 = vmatpush3.xpose.msk.msra.mxu0 %vm593_vm2, %v5794_v49  ;;  %4743 = vmatprep.mubr.msk.f32.mxu0 %vm5518_vm1, %v5519_v26  ;;  %v5839_v8 = vrot.slane %v558_v2, %v550_v51  ;;  %v560_v12 = vcombine.high %v558_v2, %v558_v2 }
 0x2a8   :  { %4746 = vmatprep.subr.mxu0 %v5519_v26  ;;  %v1977_v11 = vrot.slane %v581_v0, %v5763_v62  ;;  %v5853_v13 = vcombine.high %v581_v0, %v581_v0 }
 0x2a9   :  { %1512 = vrot.lane.b32.xlu1 %v5807_v61, %s5521_s9  ;;  %v5864_v14 = vcombine.high %v5839_v8, %v5839_v8  ;;  %v5873_v22 = vrot.slane %v560_v12, %v550_v51 }
 0x2aa   :  { %4744 = vmatmul.mubr.msk.f32.vlgmr.msra.gmra.mrb[4].mxu0 %vm593_vm2, %v581_v0  ;;  %v5823_v3 = vpop.f32.mrb[4].mxu1  ;;  %1896 = vrot.lane.b32.xlu0 %v1895_v1, %s5522_s23  ;;  %v5967_v0 = vld [vmem:[%s6420_s3 + $0x7] sm:$0x1]  ;;  %s5523_s3 = smov 32  }
 0x2ab   :  { %v5826_v4 = vpop.f32.mrb[5].mxu1  ;;  %4747 = vmatpush3.xpose.msk.msra.mxu0 %vm593_vm2, %v5812_v63  ;;  %4748 = vmatprep.mubr.msk.f32.mxu0 %vm5518_vm1, %v5519_v26  ;;  %v5892_v15 = vcombine.high %v5873_v22, %v5873_v22 }
 0x2ac   :  { %4757 = vmatpush3.xpose.msk.msra.mxu1 %vm593_vm2, %v5826_v4  ;;  %4751 = vmatprep.subr.mxu0 %v5519_v26 }
 0x2ad   :  { %1436 = vrot.lane.b32.xlu1 %v5812_v63, %s5521_s9  ;;  %4766 = vmatprep.subr.mxu1 %v5519_v26 }
 0x2ae   :  { %v5841_v9 = vpop.f32.mrb[6].mxu1  ;;  %4749 = vmatmul.mubr.msk.f32.vlgmr.msra.gmra.mrb[6].mxu0 %vm593_vm2, %v5830_v7  ;;  %1588 = vrot.lane.b32.xlu0 %v5826_v4, %s5521_s9 }
 0x2af   :  { %4752 = vmatpush3.xpose.msk.msra.mxu0 %vm593_vm2, %v5807_v61  ;;  %v5850_v10 = vpop.f32.mrb[7].mxu1  ;;  %4759 = vmatmul.mubr.msk.f32.vlgmr.msra.gmra.mrb[8].mxu1 %vm593_vm2, %v5839_v8 }
 0x2b0   :  { %4753 = vmatprep.mubr.msk.f32.mxu0 %vm5518_vm1, %v5519_v26  ;;  %4767 = vmatpush3.xpose.msk.msra.mxu1 %vm593_vm2, %v5850_v10 }
 0x2b1   :  { %1978 = vrot.lane.b32.xlu1 %v1977_v11, %s5522_s23  ;;  %4761 = vmatprep.subr.mxu0 %v5519_v26 }
 0x2b2   :  { %4754 = vmatmul.mubr.msk.f32.vlgmr.msra.gmra.mrb[8].mxu0 %vm593_vm2, %v5853_v13  ;;  %4768 = vmatprep.mubr.msk.f32.mxu1 %vm5518_vm1, %v5519_v26 }
 0x2b3   :  { %4762 = vmatpush3.xpose.msk.msra.mxu0 %vm593_vm2, %v5823_v3  ;;  %1740 = vrot.lane.b32.xlu0 %v5850_v10, %s5521_s9 }
 0x2b4   :  { %4769 = vmatmul.mubr.msk.f32.vlgmr.msra.gmra.mrb[10].mxu1 %vm593_vm2, %v5864_v14  ;;  %4763 = vmatprep.mubr.msk.f32.mxu0 %vm5518_vm1, %v5519_v26 }
 0x2b5   :  { %1664 = vrot.lane.b32.xlu1 %v5823_v3, %s5521_s9  ;;  %4771 = vmatprep.subr.mxu0 %v5519_v26 }
 0x2b6   :  { %4764 = vmatmul.mubr.msk.f32.vlgmr.msra.gmra.mrb[10].mxu0 %vm593_vm2, %v5873_v22  ;;  %4776 = vmatprep.subr.mxu1 %v5519_v26 }
 0x2b7   :  { %4772 = vmatpush3.xpose.msk.msra.mxu0 %vm593_vm2, %v5841_v9  ;;  %4773 = vmatprep.mubr.msk.f32.mxu0 %vm5518_vm1, %v5519_v26 }
 0x2b8   :  { %4781 = vmatprep.subr.mxu0 %v5519_v26  ;;  %4778 = vmatprep.mubr.msk.f32.mxu1 %vm5518_vm1, %v5519_v26 }
 0x2b9   :  { %1816 = vrot.lane.b32.xlu1 %v5841_v9, %s5521_s9 }
 0x2ba   :  { %4774 = vmatmul.mubr.msk.f32.vlgmr.msra.gmra.mrb[12].mxu0 %vm593_vm2, %v5892_v15 }
 0x2bb   :  { %4783 = vmatprep.mubr.msk.f32.mxu0 %vm5518_vm1, %v5519_v26 }
 0x313   :  { %v1361_v16 = vpop.permute.xlu1 %1360 }
 0x314   :  { %4782 = vmatpush3.msra.mxu0 %v1361_v16  ;;  %v1284_v17 = vpop.permute.xlu0 %1283 }
 0x315   :  { %4777 = vmatpush3.msra.mxu1 %v1284_v17  ;;  %4791 = vmatprep.subr.mxu0 %v5519_v26 }
 0x316   :  { %4786 = vmatprep.subr.mxu1 %v5519_v26 }
 0x317   :  { %v5975_v12 = vpop.permute.xlu1 %1980 }
 0x318   :  { %v5979_v17 = vpop.permute.xlu0 %1898 }
 0x31b   :  { %v5977_v16 = vpop.permute.xlu1 %1512 }
 0x379   :  { %v665_v19 = vpop.f32.mrb[2].mxu0 }
 0x37a   :  { %v666_v20 = vadd.f32 %v665_v19, %v5909_v18  ;;  %v4740_v21 = vpop.f32.mrb[3].mxu0  ;;  %v5981_v19 = vpop.permute.xlu1 %1436 }
 0x37b   :  { %v5983_v21 = vpop.permute.xlu0 %1896 }
 0x37c   :  { %v1195_v25 = vsel %vm1194_vm3, %v666_v20, -inf }
 0x37d   :  { %v740_v23 = vpop.f32.mrb[4].mxu0  ;;  %1196 = vmax.xlane.f32.xlu0 %v1195_v25 }
 0x37e   :  { %v741_v30 = vadd.f32 %v740_v23, %v5915_v24  ;;  %v4745_v27 = vpop.f32.mrb[5].mxu0  ;;  %v5985_v25 = vpop.permute.xlu1 %1978 }
 0x37f   :  { %v5987_v23 = vpop.permute.xlu0 %1588 }
 0x380   :  { %v1198_v29 = vsel %vm1194_vm3, %v741_v30, -inf }
 0x381   :  { %v815_v32 = vpop.f32.mrb[6].mxu0  ;;  %1199 = vmax.xlane.f32.xlu1 %v1198_v29 }
 0x382   :  { %v816_v40 = vadd.f32 %v815_v32, %v5922_v28  ;;  %v4750_v34 = vpop.f32.mrb[7].mxu0  ;;  %v965_v35 = vpop.f32.mrb[8].mxu1 }
 0x383   :  { %v966_v36 = vadd.f32 %v965_v35, %v5928_v33  ;;  %v4760_v38 = vpop.f32.mrb[9].mxu1  ;;  %v5989_v27 = vpop.permute.xlu1 %1664 }
 0x384   :  { %v1201_v39 = vsel %vm1194_vm3, %v816_v40, -inf  ;;  %v5991_v29 = vpop.permute.xlu0 %1740 }
 0x385   :  { %v890_v42 = vpop.f32.mrb[8].mxu0  ;;  %1202 = vmax.xlane.f32.xlu0 %v1201_v39  ;;  %v1207_v48 = vsel %vm1194_vm3, %v966_v36, -inf }
 0x386   :  { %v5944_v43 = vadd.f32 %v890_v42, %v5934_v31  ;;  %v4755_v44 = vpop.f32.mrb[9].mxu0 }
 0x387   :  { %v1115_v41 = vpop.f32.mrb[10].mxu1  ;;  %v5993_v32 = vpop.permute.xlu1 %1816 }
 0x388   :  { %v5947_v45 = vadd.f32 %v1115_v41, %v5941_v50  ;;  %v4770_v47 = vpop.f32.mrb[11].mxu1  ;;  %v1204_v58 = vsel %vm1194_vm3, %v5944_v43, -inf }
 0x389   :  { %v1040_v51 = vpop.f32.mrb[10].mxu0  ;;  %1205 = vmax.xlane.f32.xlu1 %v1204_v58  ;;  %1208 = vmax.xlane.f32.xlu0 %v1207_v48 }
 0x38a   :  { %v4765_v52 = vpop.f32.mrb[11].mxu0  ;;  %v1213_v55 = vsel %vm1194_vm3, %v5947_v45, -inf  ;;  %v1041_v60 = vadd.f32 %v1040_v51, %v5961_v59 }
 0x38c   :  { %v1210_v2 = vsel %vm1194_vm3, %v1041_v60, -inf }
 0x38d   :  { %v1190_v56 = vpop.f32.mrb[12].mxu0  ;;  %1214 = vmax.xlane.f32.xlu0 %v1213_v55 }
 0x38e   :  { %v4775_v57 = vpop.f32.mrb[13].mxu0  ;;  %v5970_v1 = vadd.f32 %v1190_v56, %v5967_v0 }
 0x390   :  { %v1216_v11 = vsel %vm1194_vm3, %v5970_v1, -inf }
 0x39a   :  { %2144 = vrot.lane.b32.xlu1 %v5807_v61, %s5522_s23 }
 0x3a3   :  { %2062 = vrot.lane.b32.xlu0 %v5812_v63, %s5522_s23 }
 0x3be   :  { %1211 = vmax.xlane.f32.xlu1 %v1210_v2 }
 0x3c2   :  { %1217 = vmax.xlane.f32.xlu1 %v1216_v11  ;;  %v2141_v11 = vrot.slane %v5853_v13, %v5763_v62 }
 0x40a   :  { %v1197_v34 = vpop.xlane.xlu0 %1196 }
 0x40b   :  { %v1219_v35 = vsub.f32 %v666_v20, %v1197_v34 }
 0x40d   :  { %v1227_v38 = vmul.f32 1.442695, %v1219_v35  ;;  %v2059_v35 = vrot.slane %v5830_v7, %v5763_v62 }
 0x40e   :  { %v1200_v39 = vpop.xlane.xlu1 %1199 }
 0x40f   :  { %5205 = vpow2.f32 %v1227_v38  ;;  %v1220_v42 = vsub.f32 %v741_v30, %v1200_v39 }
 0x411   :  { %v1229_v44 = vmul.f32 1.442695, %v1220_v42 }
 0x412   :  { %v1203_v41 = vpop.xlane.xlu0 %1202 }
 0x413   :  { %5207 = vpow2.f32 %v1229_v44  ;;  %v1221_v47 = vsub.f32 %v816_v40, %v1203_v41 }
 0x415   :  { %v1231_v58 = vmul.f32 1.442695, %v1221_v47 }
 0x416   :  { %v1209_v48 = vpop.xlane.xlu0 %1208  ;;  %v1206_v34 = vpop.xlane.xlu1 %1205 }
 0x417   :  { %5209 = vpow2.f32 %v1231_v58  ;;  %v1223_v51 = vsub.f32 %v966_v36, %v1209_v48  ;;  %v1222_v38 = vsub.f32 %v5944_v43, %v1206_v34 }
 0x419   :  { %v5995_v52 = vpop.eup %5205  ;;  %v1235_v55 = vmul.f32 1.442695, %v1223_v51  ;;  %v1233_v39 = vmul.f32 1.442695, %v1222_v38  ;;  %v2469_v38 = vrot.slane %v5892_v15, %v5763_v62 }
 0x41a   :  { %v1243_v56 = vsel %vm1194_vm3, %v5995_v52, 0.0  ;;  %v1215_v42 = vpop.xlane.xlu0 %1214  ;;  %v6018_v44 = vpop.permute.xlu1 %2144 }
 0x41b   :  { %1244 = vadd.xlane.f32.xlu0 %v1243_v56  ;;  %5211 = vpow2.f32 %v1235_v55  ;;  %v1225_v41 = vsub.f32 %v5947_v45, %v1215_v42 }
 0x41c   :  { %5213 = vpow2.f32 %v1233_v39 }
 0x41d   :  { %v5999_v20 = vpop.eup %5207  ;;  %v1239_v47 = vmul.f32 1.442695, %v1225_v41 }
 0x41e   :  { %v1246_v30 = vsel %vm1194_vm3, %v5999_v20, 0.0 }
 0x41f   :  { %1247 = vadd.xlane.f32.xlu1 %v1246_v30  ;;  %5215 = vpow2.f32 %v1239_v47 }
 0x421   :  { %v6003_v57 = vpop.eup %5209 }
 0x422   :  { %v1249_v40 = vsel %vm1194_vm3, %v6003_v57, 0.0 }
 0x423   :  { %1250 = vadd.xlane.f32.xlu0 %v1249_v40 }
 0x425   :  { %v6007_v36 = vpop.eup %5211 }
 0x426   :  { %v1255_v2 = vsel %vm1194_vm3, %v6007_v36, 0.0  ;;  %v6021_v51 = vpop.eup %5213 }
 0x427   :  { %1256 = vadd.xlane.f32.xlu0 %v1255_v2  ;;  %v1252_v7 = vsel %vm1194_vm3, %v6021_v51, 0.0  ;;  %v2387_v2 = vrot.slane %v5864_v14, %v5763_v62 }
 0x429   :  { %v6025_v43 = vpop.eup %5215 }
 0x42a   :  { %v1261_v45 = vsel %vm1194_vm3, %v6025_v43, 0.0 }
 0x430   :  { %2142 = vrot.lane.b32.xlu1 %v2141_v11, %s5522_s23 }
 0x43d   :  { %2060 = vrot.lane.b32.xlu0 %v2059_v35, %s5522_s23  ;;  %v2305_v35 = vrot.slane %v5873_v22, %v5763_v62 }
 0x44b   :  { %v1212_v58 = vpop.xlane.xlu1 %1211 }
 0x44c   :  { %v1224_v13 = vsub.f32 %v1041_v60, %v1212_v58  ;;  %v2223_v60 = vrot.slane %v5839_v8, %v5763_v62 }
 0x44e   :  { %v1237_v48 = vmul.f32 1.442695, %v1224_v13 }
 0x44f   :  { %v1218_v30 = vpop.xlane.xlu1 %1217 }
 0x450   :  { %5217 = vpow2.f32 %v1237_v48  ;;  %v1226_v40 = vsub.f32 %v5970_v1, %v1218_v30  ;;  %v6053_v1 = vpop.permute.xlu0 %2062 }
 0x452   :  { %v1241_v11 = vmul.f32 1.442695, %v1226_v40 }
 0x454   :  { %1253 = vadd.xlane.f32.xlu1 %v1252_v7  ;;  %5219 = vpow2.f32 %v1241_v11 }
 0x45a   :  { %v6027_v55 = vpop.eup %5217 }
 0x45b   :  { %v1258_v56 = vsel %vm1194_vm3, %v6027_v55, 0.0 }
 0x45c   :  { %1259 = vadd.xlane.f32.xlu1 %v1258_v56  ;;  %1262 = vadd.xlane.f32.xlu0 %v1261_v45 }
 0x45e   :  { %v6046_v34 = vpop.eup %5219 }
 0x45f   :  { %v1264_v8 = vsel %vm1194_vm3, %v6046_v34, 0.0 }
 0x46d   :  { %2308 = vrot.lane.b32.xlu1 %v5823_v3, %s5522_s23 }
 0x472   :  { %2226 = vrot.lane.b32.xlu0 %v5826_v4, %s5522_s23 }
 0x476   :  { %2224 = vrot.lane.b32.xlu0 %v2223_v60, %s5522_s23 }
 0x47a   :  { %2390 = vrot.lane.b32.xlu0 %v5850_v10, %s5522_s23 }
 0x47e   :  { %2388 = vrot.lane.b32.xlu0 %v2387_v2, %s5522_s23 }
 0x491   :  { %1265 = vadd.xlane.f32.xlu1 %v1264_v8 }
 0x4a2   :  { %2306 = vrot.lane.b32.xlu1 %v2305_v35, %s5522_s23 }
 0x4a6   :  { %2472 = vrot.lane.b32.xlu1 %v5841_v9, %s5522_s23 }
 0x4a8   :  { %v1245_v14 = vpop.xlane.xlu0 %1244 }
 0x4a9   :  { %5221 = vrcp.f32 %v1245_v14 }
 0x4aa   :  { %2470 = vrot.lane.b32.xlu1 %v2469_v38, %s5522_s23 }
 0x4ac   :  { %v1248_v39 = vpop.xlane.xlu1 %1247 }
 0x4ad   :  { %5223 = vrcp.f32 %v1248_v39 }
 0x4b0   :  { %v1251_v42 = vpop.xlane.xlu0 %1250 }
 0x4b1   :  { %5225 = vrcp.f32 %v1251_v42 }
 0x4b3   :  { %v5222_v41 = vpop.eup %5221 }
 0x4b4   :  { %v1275_v22 = vmul.f32 %v5222_v41, %v5995_v52  ;;  %v1257_v47 = vpop.xlane.xlu0 %1256 }
 0x4b5   :  { %5227 = vrcp.f32 %v1257_v47 }
 0x4b6   :  { %4779 = vmatmul.mubr.msk.f32.vlgmr.msra.gmra.mrb[12].mxu1 %vm1286_vm4, %v1275_v22 }
 0x4b7   :  { %v5224_v58 = vpop.eup %5223  ;;  %4787 = vmatpush3.msra.mxu1 %v5981_v19  ;;  %4788 = vmatprep.mubr.msk.f32.mxu1 %vm5518_vm1, %v5519_v26 }
 0x4b8   :  { %v1276_v15 = vmul.f32 %v5224_v58, %v5999_v20  ;;  %4796 = vmatprep.subr.mxu1 %v5519_v26 }
 0x4ba   :  { %4784 = vmatmul.mubr.msk.f32.vlgmr.msra.gmra.mrb[14].mxu0 %vm1286_vm4, %v1276_v15 }
 0x4bb   :  { %v5226_v13 = vpop.eup %5225  ;;  %4792 = vmatpush3.msra.mxu0 %v5977_v16  ;;  %4793 = vmatprep.mubr.msk.f32.mxu0 %vm5518_vm1, %v5519_v26  ;;  %v2143_v16 = vpop.permute.xlu1 %2142 }
 0x4bc   :  { %v1277_v52 = vmul.f32 %v5226_v13, %v6003_v57  ;;  %4801 = vmatprep.subr.mxu0 %v5519_v26 }
 0x4be   :  { %4789 = vmatmul.mubr.msk.f32.vlgmr.msra.gmra.mrb[14].mxu1 %vm1286_vm4, %v1277_v52 }
 0x4bf   :  { %4797 = vmatpush3.msra.mxu1 %v5987_v23  ;;  %4798 = vmatprep.mubr.msk.f32.mxu1 %vm5518_vm1, %v5519_v26  ;;  %v5228_v19 = vpop.eup %5227  ;;  %v2061_v23 = vpop.permute.xlu0 %2060 }
 0x4c0   :  { %4806 = vmatprep.subr.mxu1 %v5519_v26  ;;  %v1279_v20 = vmul.f32 %v5228_v19, %v6007_v36 }
 0x4c2   :  { %4799 = vmatmul.mubr.msk.f32.vlgmr.msra.gmra.mrb[16].mxu1 %vm1286_vm4, %v1279_v20 }
 0x4c3   :  { %4807 = vmatpush3.msra.mxu1 %v5991_v29  ;;  %4808 = vmatprep.mubr.msk.f32.mxu1 %vm5518_vm1, %v5519_v26 }
 0x4c4   :  { %4816 = vmatprep.subr.mxu1 %v5519_v26 }
 0x4e1   :  { %v1254_v57 = vpop.xlane.xlu1 %1253 }
 0x4e2   :  { %5229 = vrcp.f32 %v1254_v57 }
 0x4e9   :  { %v1260_v48 = vpop.xlane.xlu1 %1259  ;;  %v1263_v7 = vpop.xlane.xlu0 %1262 }
 0x4ea   :  { %5231 = vrcp.f32 %v1260_v48 }
 0x4eb   :  { %5233 = vrcp.f32 %v1263_v7 }
 0x4ec   :  { %v5230_v56 = vpop.eup %5229 }
 0x4ed   :  { %v1278_v36 = vmul.f32 %v5230_v56, %v6021_v51  ;;  %v2227_v30 = vpop.permute.xlu0 %2226 }
 0x4ef   :  { %4794 = vmatmul.mubr.msk.f32.vlgmr.msra.gmra.mrb[16].mxu0 %vm1286_vm4, %v1278_v36 }
 0x4f0   :  { %4802 = vmatpush3.msra.mxu0 %v5989_v27  ;;  %4803 = vmatprep.mubr.msk.f32.mxu0 %vm5518_vm1, %v5519_v26 }
 0x4f1   :  { %4811 = vmatprep.subr.mxu0 %v5519_v26  ;;  %v2225_v27 = vpop.permute.xlu0 %2224 }
 0x4f4   :  { %v5232_v29 = vpop.eup %5231 }
 0x4f5   :  { %v5234_v45 = vpop.eup %5233  ;;  %v1280_v60 = vmul.f32 %v5232_v29, %v6027_v55 }
 0x4f6   :  { %v1281_v40 = vmul.f32 %v5234_v45, %v6025_v43 }
 0x4f7   :  { %4804 = vmatmul.mubr.msk.f32.vlgmr.msra.gmra.mrb[18].mxu0 %vm1286_vm4, %v1280_v60 }
 0x4f8   :  { %4809 = vmatmul.mubr.msk.f32.vlgmr.msra.gmra.mrb[18].mxu1 %vm1286_vm4, %v1281_v40  ;;  %4812 = vmatpush3.msra.mxu0 %v5993_v32  ;;  %v2309_v32 = vpop.permute.xlu1 %2308 }
 0x4f9   :  { %4817 = vmatpush3.xpose.msk.msra.mxu1 %vm593_vm2, %v5979_v17  ;;  %4818 = vmatprep.mubr.msk.f32.mxu1 %vm5518_vm1, %v5519_v26  ;;  %v2391_v17 = vpop.permute.xlu0 %2390 }
 0x4fa   :  { %4826 = vmatprep.subr.mxu1 %v5519_v26  ;;  %4813 = vmatprep.mubr.msk.f32.mxu0 %vm5518_vm1, %v5519_v26 }
 0x4fb   :  { %4821 = vmatprep.subr.mxu0 %v5519_v26 }
 0x4fc   :  { %4819 = vmatmul.mubr.msk.f32.vlgmr.msra.gmra.mrb[20].mxu1 %vm593_vm2, %v5983_v21 }
 0x4fd   :  { %4827 = vmatpush3.xpose.msk.msra.mxu1 %vm593_vm2, %v6053_v1  ;;  %4828 = vmatprep.mubr.msk.f32.mxu1 %vm5518_vm1, %v5519_v26  ;;  %v2389_v21 = vpop.permute.xlu0 %2388 }
 0x4fe   :  { %4836 = vmatprep.subr.mxu1 %v5519_v26 }
 0x500   :  { %4829 = vmatmul.mubr.msk.f32.vlgmr.msra.gmra.mrb[22].mxu1 %vm593_vm2, %v2061_v23 }
 0x501   :  { %4837 = vmatpush3.xpose.msk.msra.mxu1 %vm593_vm2, %v2227_v30  ;;  %4838 = vmatprep.mubr.msk.f32.mxu1 %vm5518_vm1, %v5519_v26 }
 0x502   :  { %4846 = vmatprep.subr.mxu1 %v5519_v26 }
 0x504   :  { %4839 = vmatmul.mubr.msk.f32.vlgmr.msra.gmra.mrb[24].mxu1 %vm593_vm2, %v2225_v27 }
 0x505   :  { %4847 = vmatpush3.xpose.msk.msra.mxu1 %vm593_vm2, %v2391_v17  ;;  %4848 = vmatprep.mubr.msk.f32.mxu1 %vm5518_vm1, %v5519_v26 }
 0x506   :  { %4856 = vmatprep.subr.mxu1 %v5519_v26 }
 0x508   :  { %4849 = vmatmul.mubr.msk.f32.vlgmr.msra.gmra.mrb[26].mxu1 %vm593_vm2, %v2389_v21 }
 0x509   :  { %4858 = vmatprep.mubr.msk.f32.mxu1 %vm5518_vm1, %v5519_v26 }
 0x51e   :  { %v1266_v51 = vpop.xlane.xlu1 %1265 }
 0x51f   :  { %5235 = vrcp.f32 %v1266_v51 }
 0x522   :  { %v2307_v2 = vpop.permute.xlu1 %2306 }
 0x529   :  { %v5236_v43 = vpop.eup %5235 }
 0x52a   :  { %v1282_v55 = vmul.f32 %v5236_v43, %v6046_v34 }
 0x52c   :  { %4814 = vmatmul.mubr.msk.f32.vlgmr.msra.gmra.mrb[20].mxu0 %vm1286_vm4, %v1282_v55 }
 0x52d   :  { %4822 = vmatpush3.xpose.msk.msra.mxu0 %vm593_vm2, %v5975_v12  ;;  %4823 = vmatprep.mubr.msk.f32.mxu0 %vm5518_vm1, %v5519_v26  ;;  %v2473_v12 = vpop.permute.xlu1 %2472 }
 0x52e   :  { %4831 = vmatprep.subr.mxu0 %v5519_v26 }
 0x530   :  { %4824 = vmatmul.mubr.msk.f32.vlgmr.msra.gmra.mrb[22].mxu0 %vm593_vm2, %v5985_v25 }
 0x531   :  { %4832 = vmatpush3.xpose.msk.msra.mxu0 %vm593_vm2, %v6018_v44  ;;  %4833 = vmatprep.mubr.msk.f32.mxu0 %vm5518_vm1, %v5519_v26  ;;  %v2471_v25 = vpop.permute.xlu1 %2470 }
 0x532   :  { %4841 = vmatprep.subr.mxu0 %v5519_v26 }
 0x534   :  { %4834 = vmatmul.mubr.msk.f32.vlgmr.msra.gmra.mrb[24].mxu0 %vm593_vm2, %v2143_v16 }
 0x535   :  { %4842 = vmatpush3.xpose.msk.msra.mxu0 %vm593_vm2, %v2309_v32  ;;  %4843 = vmatprep.mubr.msk.f32.mxu0 %vm5518_vm1, %v5519_v26 }
 0x536   :  { %4851 = vmatprep.subr.mxu0 %v5519_v26 }
 0x538   :  { %4844 = vmatmul.mubr.msk.f32.vlgmr.msra.gmra.mrb[26].mxu0 %vm593_vm2, %v2307_v2 }
 0x539   :  { %4852 = vmatpush3.xpose.msk.msra.mxu0 %vm593_vm2, %v2473_v12  ;;  %4853 = vmatprep.mubr.msk.f32.mxu0 %vm5518_vm1, %v5519_v26 }
 0x53a   :  { %4861 = vmatprep.subr.mxu0 %v5519_v26 }
 0x53c   :  { %4854 = vmatmul.mubr.msk.f32.vlgmr.msra.gmra.mrb[28].mxu0 %vm593_vm2, %v2471_v25 }
 0x53d   :  { %4863 = vmatprep.mubr.msk.f32.mxu0 %vm5518_vm1, %v5519_v26 }
 0x589   :  { %v1356_v44 = vpop.f32.mrb[12].mxu1 }
 0x58a   :  { %v4780_v11 = vpop.f32.mrb[13].mxu1 }
 0x58d   :  { %v1432_v34 = vpop.f32.mrb[14].mxu0 }
 0x58e   :  { %v3252_v8 = vrot.slane %v1432_v34, 7  ;;  %v4785_v35 = vpop.f32.mrb[15].mxu0 }
 0x590   :  { %v3254_v1 = vsel %vm3253_vm5, %v3252_v8, %v1356_v44 }
 0x591   :  { %v1508_v14 = vpop.f32.mrb[14].mxu1 }
 0x592   :  { %v3255_v38 = vrot.slane %v1508_v14, 6  ;;  %v4790_v39 = vpop.f32.mrb[15].mxu1 }
 0x594   :  { %v3257_v42 = vsel %vm3256_vm6, %v3255_v38, %v3254_v1 }
 0x595   :  { %v1660_v41 = vpop.f32.mrb[16].mxu1 }
 0x596   :  { %v4800_v22 = vpop.f32.mrb[17].mxu1  ;;  %v3261_v13 = vrot.slane %v1660_v41, 4 }
 0x5c2   :  { %v1584_v47 = vpop.f32.mrb[16].mxu0 }
 0x5c3   :  { %v3258_v58 = vrot.slane %v1584_v47, 5  ;;  %v4795_v15 = vpop.f32.mrb[17].mxu0 }
 0x5c5   :  { %v3260_v52 = vsel %vm3259_vm7, %v3258_v58, %v3257_v42 }
 0x5c6   :  { %v3263_v19 = vsel %vm3262_vm8, %v3261_v13, %v3260_v52 }
 0x5ca   :  { %v1736_v20 = vpop.f32.mrb[18].mxu0 }
 0x5cb   :  { %v3264_v16 = vrot.slane %v1736_v20, 3  ;;  %v1812_v57 = vpop.f32.mrb[18].mxu1  ;;  %v4805_v23 = vpop.f32.mrb[19].mxu0 }
 0x5cc   :  { %v3267_v48 = vrot.slane %v1812_v57, 2  ;;  %v4810_v7 = vpop.f32.mrb[19].mxu1 }
 0x5cd   :  { %v3266_v56 = vsel %vm3265_vm9, %v3264_v16, %v3263_v19 }
 0x5ce   :  { %v3269_v36 = vsel %vm3268_vm10, %v3267_v48, %v3266_v56 }
 0x5cf   :  { %v1970_v29 = vpop.f32.mrb[20].mxu1 }
 0x5d0   :  { %v1971_v45 = vadd.f32 %v1970_v29, %v5909_v18  ;;  %v4820_v60 = vpop.f32.mrb[21].mxu1 }
 0x5d2   :  { %v2548_v30 = vsel %vm1194_vm3, %v1971_v45, -inf }
 0x5d3   :  { %2549 = vmax.xlane.f32.xlu0 %v2548_v30  ;;  %v2134_v40 = vpop.f32.mrb[22].mxu1 }
 0x5d4   :  { %v2135_v27 = vadd.f32 %v2134_v40, %v5922_v28  ;;  %v4830_v17 = vpop.f32.mrb[23].mxu1 }
 0x5d6   :  { %v2554_v21 = vsel %vm1194_vm3, %v2135_v27, -inf }
 0x5d7   :  { %2555 = vmax.xlane.f32.xlu0 %v2554_v21  ;;  %v2298_v32 = vpop.f32.mrb[24].mxu1 }
 0x5d8   :  { %v4840_v51 = vpop.f32.mrb[25].mxu1  ;;  %v2299_v14 = vadd.f32 %v2298_v32, %v5928_v33 }
 0x5da   :  { %v2560_v47 = vsel %vm1194_vm3, %v2299_v14, -inf }
 0x5db   :  { %v2462_v43 = vpop.f32.mrb[26].mxu1 }
 0x5dc   :  { %v4850_v55 = vpop.f32.mrb[27].mxu1  ;;  %v2463_v22 = vadd.f32 %v2462_v43, %v5941_v50 }
 0x5de   :  { %v2566_v13 = vsel %vm1194_vm3, %v2463_v22, -inf }
 0x5ff   :  { %v1888_v2 = vpop.f32.mrb[20].mxu0 }
 0x600   :  { %v3270_v12 = vrot.slane %v1888_v2, 1  ;;  %v4815_v25 = vpop.f32.mrb[21].mxu0 }
 0x602   :  { %v6161_v18 = vsel %vm3271_vm11, %v3270_v12, %v3269_v36 }
 0x603   :  { %v2052_v44 = vpop.f32.mrb[22].mxu0 }
 0x604   :  { %v2053_v11 = vadd.f32 %v2052_v44, %v5915_v24  ;;  %v4825_v34 = vpop.f32.mrb[23].mxu0 }
 0x606   :  { %v2551_v28 = vsel %vm1194_vm3, %v2053_v11, -inf }
 0x607   :  { %2552 = vmax.xlane.f32.xlu1 %v2551_v28  ;;  %v2216_v8 = vpop.f32.mrb[24].mxu0 }
 0x608   :  { %v2217_v35 = vadd.f32 %v2216_v8, %v5934_v31  ;;  %v4835_v1 = vpop.f32.mrb[25].mxu0 }
 0x60a   :  { %v2557_v38 = vsel %vm1194_vm3, %v2217_v35, -inf }
 0x60b   :  { %v2380_v39 = vpop.f32.mrb[26].mxu0  ;;  %2558 = vmax.xlane.f32.xlu0 %v2557_v38 }
 0x60c   :  { %v2381_v42 = vadd.f32 %v2380_v39, %v5961_v59  ;;  %v4845_v41 = vpop.f32.mrb[27].mxu0 }
 0x60e   :  { %v2563_v24 = vsel %vm1194_vm3, %v2381_v42, -inf }
 0x60f   :  { %2564 = vmax.xlane.f32.xlu1 %v2563_v24  ;;  %v2544_v58 = vpop.f32.mrb[28].mxu0  ;;  %2561 = vmax.xlane.f32.xlu0 %v2560_v47 }
 0x610   :  { %v2545_v31 = vadd.f32 %v2544_v58, %v5967_v0  ;;  %v4855_v15 = vpop.f32.mrb[29].mxu0 }
 0x612   :  { %v2569_v33 = vsel %vm1194_vm3, %v2545_v31, -inf }
 0x613   :  { %2570 = vmax.xlane.f32.xlu1 %v2569_v33  ;;  %2567 = vmax.xlane.f32.xlu0 %v2566_v13 }
 0x624   :  { %2712 = vrot.lane.b32.xlu1 %v5794_v49, %s5523_s3 }
 0x628   :  { %2788 = vrot.lane.b32.xlu1 %v5812_v63, %s5523_s3 }
 0x629   :  { %2636 = vrot.lane.b32.xlu0 %v5796_v53, %s5523_s3 }
 0x62c   :  { %2864 = vrot.lane.b32.xlu1 %v5807_v61, %s5523_s3 }
 0x62d   :  { %2940 = vrot.lane.b32.xlu0 %v5826_v4, %s5523_s3 }
 0x630   :  { %3016 = vrot.lane.b32.xlu1 %v5823_v3, %s5523_s3 }
 0x660   :  { %v2550_v50 = vpop.xlane.xlu0 %2549 }
 0x661   :  { %v2572_v59 = vsub.f32 %v1971_v45, %v2550_v50 }
 0x663   :  { %v2580_v0 = vmul.f32 1.442695, %v2572_v59 }
 0x664   :  { %v2556_v52 = vpop.xlane.xlu0 %2555 }
 0x665   :  { %5237 = vpow2.f32 %v2580_v0  ;;  %v2574_v49 = vsub.f32 %v2135_v27, %v2556_v52 }
 0x667   :  { %v2584_v19 = vmul.f32 1.442695, %v2574_v49 }
 0x669   :  { %5239 = vpow2.f32 %v2584_v19 }
 0x66f   :  { %v5238_v63 = vpop.eup %5237 }
 0x670   :  { %v2596_v53 = vsel %vm1194_vm3, %v5238_v63, 0.0 }
 0x671   :  { %2597 = vadd.xlane.f32.xlu0 %v2596_v53 }
 0x673   :  { %v6188_v20 = vpop.eup %5239 }
 0x674   :  { %v2602_v61 = vsel %vm1194_vm3, %v6188_v20, 0.0 }
 0x675   :  { %2603 = vadd.xlane.f32.xlu0 %v2602_v61 }
 0x694   :  { %v2553_v4 = vpop.xlane.xlu1 %2552 }
 0x695   :  { %v2573_v3 = vsub.f32 %v2053_v11, %v2553_v4 }
 0x697   :  { %v2582_v16 = vmul.f32 1.442695, %v2573_v3 }
 0x698   :  { %v2559_v57 = vpop.xlane.xlu0 %2558 }
 0x699   :  { %5241 = vpow2.f32 %v2582_v16  ;;  %v2575_v23 = vsub.f32 %v2217_v35, %v2559_v57 }
 0x69b   :  { %v2586_v48 = vmul.f32 1.442695, %v2575_v23 }
 0x69c   :  { %v2565_v7 = vpop.xlane.xlu1 %2564  ;;  %v2562_v56 = vpop.xlane.xlu0 %2561 }
 0x69d   :  { %5243 = vpow2.f32 %v2586_v48  ;;  %v2577_v36 = vsub.f32 %v2381_v42, %v2565_v7  ;;  %v2576_v29 = vsub.f32 %v2299_v14, %v2562_v56  ;;  %v325_v7 = vld [vmem:[#allocation10 + $0x40] sm:$0xff]  ;;  %v326_v56 = vld [vmem:[#allocation10 + $0x48] sm:$0xff] }
 0x69f   :  { %v2590_v45 = vmul.f32 1.442695, %v2577_v36  ;;  %v2588_v60 = vmul.f32 1.442695, %v2576_v29  ;;  %v327_v36 = vld [vmem:[#allocation10 + $0x50] sm:$0xff]  ;;  %v5060_v29 = vpack.c.bf16 %v326_v56, %v325_v7 }
 0x6a0   :  { %v2571_v30 = vpop.xlane.xlu1 %2570  ;;  %v2568_v40 = vpop.xlane.xlu0 %2567 }
 0x6a1   :  { %5245 = vpow2.f32 %v2590_v45  ;;  %v2579_v27 = vsub.f32 %v2545_v31, %v2571_v30  ;;  %v2578_v17 = vsub.f32 %v2463_v22, %v2568_v40  ;;  %v328_v45 = vld [vmem:[#allocation10 + $0x58] sm:$0xff]  ;;  %v329_v30 = vld [vmem:[#allocation10 + $0x60] sm:$0xff]  ;;  %v330_v40 = vld [vmem:[#allocation10 + $0x68] sm:$0xff] }
 0x6a2   :  { %5247 = vpow2.f32 %v2588_v60  ;;  %v5063_v60 = vpack.c.bf16 %v328_v45, %v327_v36 }
 0x6a3   :  { %v5242_v21 = vpop.eup %5241  ;;  %v2594_v32 = vmul.f32 1.442695, %v2579_v27  ;;  %v2592_v51 = vmul.f32 1.442695, %v2578_v17  ;;  %v5066_v27 = vpack.c.bf16 %v330_v40, %v329_v30  ;;  %v331_v17 = vld [vmem:[#allocation10 + $0x70] sm:$0xff] }
 0x6a4   :  { %v2713_v43 = vpop.permute.xlu1 %2712  ;;  %v2637_v55 = vpop.permute.xlu0 %2636  ;;  %v2599_v2 = vsel %vm1194_vm3, %v5242_v21, 0.0 }
 0x6a5   :  { %5249 = vpow2.f32 %v2594_v32  ;;  %2600 = vadd.xlane.f32.xlu1 %v2599_v2  ;;  %4857 = vmatpush3.msra.mxu1 %v2637_v55 }
 0x6a6   :  { %5251 = vpow2.f32 %v2592_v51  ;;  %4862 = vmatpush3.msra.mxu0 %v2713_v43  ;;  %4866 = vmatprep.subr.mxu1 %v5519_v26 }
 0x6a7   :  { %v5244_v12 = vpop.eup %5243  ;;  %4871 = vmatprep.subr.mxu0 %v5519_v26 }
 0x6a8   :  { %v2605_v25 = vsel %vm1194_vm3, %v5244_v12, 0.0  ;;  %v2941_v38 = vpop.permute.xlu0 %2940  ;;  %v2789_v24 = vpop.permute.xlu1 %2788 }
 0x6a9   :  { %2606 = vadd.xlane.f32.xlu1 %v2605_v25 }
 0x6ab   :  { %v5246_v44 = vpop.eup %5245 }
 0x6ac   :  { %v5248_v11 = vpop.eup %5247  ;;  %v2611_v34 = vsel %vm1194_vm3, %v5246_v44, 0.0 }
 0x6ad   :  { %2612 = vadd.xlane.f32.xlu1 %v2611_v34  ;;  %v2608_v28 = vsel %vm1194_vm3, %v5248_v11, 0.0 }
 0x6ae   :  { %2609 = vadd.xlane.f32.xlu0 %v2608_v28 }
 0x6af   :  { %v6198_v8 = vpop.eup %5249 }
 0x6b0   :  { %v6200_v35 = vpop.eup %5251  ;;  %v2617_v1 = vsel %vm1194_vm3, %v6198_v8, 0.0 }
 0x6b1   :  { %2618 = vadd.xlane.f32.xlu1 %v2617_v1  ;;  %v2614_v14 = vsel %vm1194_vm3, %v6200_v35, 0.0 }
 0x6b2   :  { %2615 = vadd.xlane.f32.xlu0 %v2614_v14  ;;  %v150_v14 = vld [vmem:[#allocation7] sm:$0xff] }
 0x6c2   :  { %3168 = vrot.lane.b32.xlu1 %v5841_v9, %s5523_s3 }
 0x6c8   :  { %3092 = vrot.lane.b32.xlu0 %v5850_v10, %s5523_s3  ;;  %v2865_v10 = vpop.permute.xlu1 %2864 }
 0x6cc   :  { %v3017_v58 = vpop.permute.xlu1 %3016 }
 0x6fe   :  { %v2598_v39 = vpop.xlane.xlu0 %2597 }
 0x6ff   :  { %5253 = vrcp.f32 %v2598_v39  ;;  %v3402_v39 = vsel %vm163_vm0, %v150_v14, 0.0 }
 0x700   :  { %3403 = vadd.xlane.f32.xlu1 %v3402_v39 }
 0x702   :  { %v2604_v42 = vpop.xlane.xlu0 %2603 }
 0x703   :  { %5255 = vrcp.f32 %v2604_v42 }
 0x709   :  { %v5254_v41 = vpop.eup %5253 }
 0x70a   :  { %v2628_v22 = vmul.f32 %v5254_v41, %v5238_v63 }
 0x70c   :  { %4859 = vmatmul.mubr.msk.f32.vlgmr.msra.gmra.mrb[28].mxu1 %vm1286_vm4, %v2628_v22 }
 0x70d   :  { %v5256_v47 = vpop.eup %5255  ;;  %4867 = vmatpush3.msra.mxu1 %v2789_v24  ;;  %4868 = vmatprep.mubr.msk.f32.mxu1 %vm5518_vm1, %v5519_v26 }
 0x70e   :  { %v2630_v9 = vmul.f32 %v5256_v47, %v6188_v20  ;;  %4876 = vmatprep.subr.mxu1 %v5519_v26 }
 0x710   :  { %4869 = vmatmul.mubr.msk.f32.vlgmr.msra.gmra.mrb[30].mxu1 %vm1286_vm4, %v2630_v9 }
 0x711   :  { %4877 = vmatpush3.msra.mxu1 %v2941_v38  ;;  %4878 = vmatprep.mubr.msk.f32.mxu1 %vm5518_vm1, %v5519_v26 }
 0x712   :  { %4886 = vmatprep.subr.mxu1 %v5519_v26 }
 0x732   :  { %v2601_v31 = vpop.xlane.xlu1 %2600 }
 0x733   :  { %5257 = vrcp.f32 %v2601_v31 }
 0x736   :  { %v2607_v15 = vpop.xlane.xlu1 %2606 }
 0x737   :  { %5259 = vrcp.f32 %v2607_v15 }
 0x73a   :  { %v2613_v33 = vpop.xlane.xlu1 %2612 }
 0x73b   :  { %5261 = vrcp.f32 %v2613_v33  ;;  %v2610_v13 = vpop.xlane.xlu0 %2609 }
 0x73c   :  { %5263 = vrcp.f32 %v2610_v13 }
 0x73d   :  { %v5258_v50 = vpop.eup %5257 }
 0x73e   :  { %v2629_v59 = vmul.f32 %v5258_v50, %v5242_v21  ;;  %v2619_v0 = vpop.xlane.xlu1 %2618  ;;  %v332_v21 = vld [vmem:[#allocation10 + $0x78] sm:$0xff] }
 0x73f   :  { %5265 = vrcp.f32 %v2619_v0  ;;  %v2616_v52 = vpop.xlane.xlu0 %2615  ;;  %v5069_v32 = vpack.c.bf16 %v332_v21, %v331_v17  ;;  %v6270_v21 = vld [vmem:[%s6424_s7] sm:$0xff]  ;;  %s5524_s7 = smov [#allocation16]  }
 0x740   :  { %5267 = vrcp.f32 %v2616_v52  ;;  %4864 = vmatmul.mubr.msk.f32.vlgmr.msra.gmra.mrb[30].mxu0 %vm1286_vm4, %v2629_v59  ;;  %s4444_s19 = sshll.u32 %s5524_s7, 4  ;;  %s4445_s19 = int_to_ptr.vmem [resolvable:$true] %s4444_s19 }
 0x741   :  { %v5260_v49 = vpop.eup %5259  ;;  %4872 = vmatpush3.msra.mxu0 %v2865_v10  ;;  %4873 = vmatprep.mubr.msk.f32.mxu0 %vm5518_vm1, %v5519_v26  ;;  %s5473_s20 = scalar_lea.vmem %s4445_s19, 128  ;;  %p5478_p9 = scmp.lt.s32.totalorder %s4445_s19, %s4445_s19 }
 0x742   :  { %v2631_v19 = vmul.f32 %v5260_v49, %v5244_v12  ;;  %4881 = vmatprep.subr.mxu0 %v5519_v26  ;;  %v3169_v4 = vpop.permute.xlu1 %3168  ;;  %v151_v49 = vld [vmem:[#allocation7 + $0x8] sm:$0xff]  ;;  %p5474_p8 = scmp.ne.s32.totalorder %s4445_s19, %s5473_s20  ;;  %p5479_p10 = scmp.lt.s32.totalorder %s5473_s20, %s5473_s20 }
 0x743   :  { %v3093_v16 = vpop.permute.xlu0 %3092 }
 0x744   :  { %4874 = vmatmul.mubr.msk.f32.vlgmr.msra.gmra.mrb[32].mxu0 %vm1286_vm4, %v2631_v19  ;;  %v3405_v19 = vsel %vm163_vm0, %v151_v49, 0.0  ;;  %p5480_p11 = por %p5479_p10, %p5478_p9 }
 0x745   :  { %v5262_v63 = vpop.eup %5261  ;;  %4882 = vmatpush3.msra.mxu0 %v3017_v58  ;;  %4883 = vmatprep.mubr.msk.f32.mxu0 %vm5518_vm1, %v5519_v26 }
 0x746   :  { %v5264_v53 = vpop.eup %5263  ;;  %v2633_v20 = vmul.f32 %v5262_v63, %v5246_v44  ;;  %4891 = vmatprep.subr.mxu0 %v5519_v26  ;;  %v152_v63 = vld [vmem:[#allocation7 + $0x10] sm:$0xff]  ;;  %p5481_p12 = pnand %p5480_p11, %p5474_p8 }
 0x747   :  { %v2632_v61 = vmul.f32 %v5264_v53, %v5248_v11  ;;  %v3408_v53 = vsel %vm163_vm0, %v152_v63, 0.0 }
 0x748   :  { %4884 = vmatmul.mubr.msk.f32.vlgmr.msra.gmra.mrb[34].mxu0 %vm1286_vm4, %v2633_v20  ;;  %v153_v20 = vld [vmem:[#allocation7 + $0x18] sm:$0xff] }
 0x749   :  { %v5266_v3 = vpop.eup %5265  ;;  %4879 = vmatmul.mubr.msk.f32.vlgmr.msra.gmra.mrb[32].mxu1 %vm1286_vm4, %v2632_v61  ;;  %4892 = vmatpush3.msra.mxu0 %v3169_v4  ;;  %v3411_v61 = vsel %vm163_vm0, %v153_v20, 0.0 }
 0x74a   :  { %v5268_v57 = vpop.eup %5267  ;;  %v2635_v23 = vmul.f32 %v5266_v3, %v6198_v8  ;;  %4887 = vmatpush3.msra.mxu1 %v3093_v16  ;;  %4888 = vmatprep.mubr.msk.f32.mxu1 %vm5518_vm1, %v5519_v26 }
 0x74b   :  { %v2634_v48 = vmul.f32 %v5268_v57, %v6200_v35  ;;  %4893 = vmatprep.mubr.msk.f32.mxu0 %vm5518_vm1, %v5519_v26  ;;  %5059 = vmatprep.subr.bf16.mxu1 %v5517_v5 }
 0x74c   :  { %4894 = vmatmul.mubr.msk.f32.vlgmr.msra.gmra.mrb[36].mxu0 %vm1286_vm4, %v2635_v23  ;;  %5071 = vmatprep.subr.bf16.mxu0 %v5517_v5 }
 0x74d   :  { %4889 = vmatmul.mubr.msk.f32.vlgmr.msra.gmra.mrb[34].mxu1 %vm1286_vm4, %v2634_v48  ;;  %4931 = vmatprep.mubr.msk.f32.mxu0 %vm5518_vm1, %v5519_v26 }
 0x74e   :  { %4912 = vmatprep.mubr.msk.f32.mxu1 %vm5518_vm1, %v5519_v26  ;;  %5061 = vmatpush3.bf16.msra.mxu1 %v5060_v29 }
 0x74f   :  { %5062 = vmatprep.subr.bf16.mxu1 %v5517_v5 }
 0x752   :  { %5064 = vmatpush3.bf16.msra.mxu1 %v5063_v60 }
 0x753   :  { %5065 = vmatprep.subr.bf16.mxu1 %v5517_v5 }
 0x756   :  { %5067 = vmatpush3.bf16.msra.mxu1 %v5066_v27 }
 0x757   :  { %5068 = vmatprep.subr.bf16.mxu1 %v5517_v5 }
 0x75a   :  { %5070 = vmatpush3.bf16.msra.mxu1 %v5069_v32  ;;  %v6275_v32 = vrot.slane %v6270_v21, %v294_v46 }
 0x78d   :  { %v3404_v16 = vpop.xlane.xlu1 %3403 }
 0x78e   :  { %v3414_v57 = vmul.f32 0.015625, %v3404_v16 }
 0x790   :  { %v3418_v23 = vsub.f32 %v150_v14, %v3414_v57  ;;  %v5296_v14 = vld [vmem:[#allocation2] sm:$0xff] }
 0x792   :  { %v3422_v48 = vmul.f32 %v3418_v23, %v3418_v23 }
 0x794   :  { %v3426_v7 = vsel %vm163_vm0, %v3422_v48, 0.0 }
 0x7df   :  { %v2708_v51 = vpop.f32.mrb[28].mxu1 }
 0x7e0   :  { %v4860_v43 = vpop.f32.mrb[29].mxu1 }
 0x7e3   :  { %v2860_v55 = vpop.f32.mrb[30].mxu1 }
 0x7e4   :  { %v4870_v2 = vpop.f32.mrb[31].mxu1  ;;  %v3284_v11 = vrot.slane %v2860_v55, 6  ;;  %v6280_v55 = vrot.slane %v6270_v21, %v306_v54 }
 0x813   :  { %v2784_v12 = vpop.f32.mrb[30].mxu0 }
 0x814   :  { %v3282_v25 = vrot.slane %v2784_v12, 7  ;;  %v4865_v44 = vpop.f32.mrb[31].mxu0 }
 0x816   :  { %v3283_v34 = vsel %vm3253_vm5, %v3282_v25, %v2708_v51  ;;  %v3302_v25 = vsub.s32 4, %v5756_v37 }
 0x817   :  { %v2936_v28 = vpop.f32.mrb[32].mxu0  ;;  %v3285_v8 = vsel %vm3256_vm6, %v3284_v11, %v3283_v34  ;;  %v5295_v11 = vld [vmem:[#allocation8] sm:$0xff] }
 0x818   :  { %v3286_v35 = vrot.slane %v2936_v28, 5  ;;  %v4875_v1 = vpop.f32.mrb[33].mxu0  ;;  %v3303_v46 = vrot.slane %v5295_v11, %v3302_v25 }
 0x81a   :  { %v3287_v38 = vsel %vm3259_vm7, %v3286_v35, %v3285_v8 }
 0x81b   :  { %v3088_v42 = vpop.f32.mrb[34].mxu0 }
 0x81c   :  { %v3012_v41 = vpop.f32.mrb[32].mxu1  ;;  %v3290_v22 = vrot.slane %v3088_v42, 3  ;;  %v4885_v24 = vpop.f32.mrb[35].mxu0 }
 0x81d   :  { %v3288_v47 = vrot.slane %v3012_v41, 4  ;;  %v4880_v9 = vpop.f32.mrb[33].mxu1 }
 0x81e   :  { %v3561_v9 = vld [vmem:[#allocation14 + $0x8] sm:$0xff] }
 0x81f   :  { %v3289_v10 = vsel %vm3262_vm8, %v3288_v47, %v3287_v38  ;;  %v3240_v58 = vpop.f32.mrb[36].mxu0  ;;  %v3560_v47 = vld [vmem:[#allocation14] sm:$0xff] }
 0x820   :  { %v3291_v31 = vsel %vm3265_vm9, %v3290_v22, %v3289_v10  ;;  %v3164_v15 = vpop.f32.mrb[34].mxu1  ;;  %v3294_v33 = vrot.slane %v3240_v58, 1  ;;  %v4895_v13 = vpop.f32.mrb[37].mxu0  ;;  %v5083_v10 = vpack.c.bf16 %v3561_v9, %v3560_v47  ;;  %v3562_v58 = vld [vmem:[#allocation14 + $0x10] sm:$0xff] }
 0x821   :  { %v3292_v50 = vrot.slane %v3164_v15, 2  ;;  %v4890_v59 = vpop.f32.mrb[35].mxu1  ;;  %v3565_v13 = vld [vmem:[#allocation14 + $0x28] sm:$0xff] }
 0x822   :  { %5084 = vmatprep.subr.bf16.mxu1 %v5083_v10  ;;  %v3566_v59 = vld [vmem:[#allocation14 + $0x30] sm:$0xff] }
 0x823   :  { %v3293_v0 = vsel %vm3268_vm10, %v3292_v50, %v3291_v31  ;;  %v3563_v31 = vld [vmem:[#allocation14 + $0x18] sm:$0xff] }
 0x824   :  { %v3295_v52 = vsel %vm3271_vm11, %v3294_v33, %v3293_v0  ;;  %v5087_v15 = vpack.c.bf16 %v3563_v31, %v3562_v58  ;;  %v3564_v33 = vld [vmem:[#allocation14 + $0x20] sm:$0xff]  ;;  %v3567_v0 = vld [vmem:[#allocation14 + $0x38] sm:$0xff] }
 0x825   :  { %3296 = vrot.lane.b32.xlu0 %v3295_v52, %s5523_s3  ;;  %v5091_v50 = vpack.c.bf16 %v3565_v13, %v3564_v33  ;;  %v5095_v52 = vpack.c.bf16 %v3567_v0, %v3566_v59 }
 0x844   :  { %3406 = vadd.xlane.f32.xlu0 %v3405_v19 }
 0x848   :  { %3409 = vadd.xlane.f32.xlu0 %v3408_v53 }
 0x84c   :  { %3412 = vadd.xlane.f32.xlu0 %v3411_v61 }
 0x850   :  { %3427 = vadd.xlane.f32.xlu0 %v3426_v7 }
 0x897   :  { %v3297_v4 = vpop.permute.xlu0 %3296 }
 0x898   :  { %v3299_v3 = vsel %vm593_vm2, %v6161_v18, %v3297_v4 }
 0x899   :  { %4913 = vmatmul.mubr.msk.f32.vlgmr.msra.gmra.mrb[36].mxu1 %vm163_vm0, %v3299_v3 }
 0x89a   :  { %5086 = vmatpush3.bf16.msra.mxu1 %v5083_v10 }
 0x89b   :  { %5088 = vmatprep.subr.bf16.mxu1 %v5087_v15 }
 0x89e   :  { %5090 = vmatpush3.bf16.msra.mxu1 %v5087_v15 }
 0x89f   :  { %5092 = vmatprep.subr.bf16.mxu1 %v5091_v50 }
 0x8a2   :  { %5094 = vmatpush3.bf16.msra.mxu1 %v5091_v50 }
 0x8a3   :  { %5096 = vmatprep.subr.bf16.mxu1 %v5095_v52 }
 0x8a6   :  { %5098 = vmatpush3.bf16.msra.mxu1 %v5095_v52 }
 0x8a7   :  { %5099 = vmatprep.subr.bf16.mxu1 %v5517_v5 }
 0x8d1   :  { %v3407_v56 = vpop.xlane.xlu0 %3406 }
 0x8d2   :  { %v3415_v44 = vmul.f32 0.015625, %v3407_v56 }
 0x8d4   :  { %v3419_v34 = vsub.f32 %v151_v49, %v3415_v44  ;;  %v3471_v44 = vld [vmem:[#allocation13 + $0x8] sm:$0xff] }
 0x8d5   :  { %v3410_v36 = vpop.xlane.xlu0 %3409 }
 0x8d6   :  { %v3416_v29 = vmul.f32 0.015625, %v3410_v36  ;;  %v3423_v39 = vmul.f32 %v3419_v34, %v3419_v34 }
 0x8d8   :  { %v6262_v45 = vsub.f32 %v152_v63, %v3416_v29  ;;  %v3429_v41 = vsel %vm163_vm0, %v3423_v39, 0.0 }
 0x8d9   :  { %v3413_v18 = vpop.xlane.xlu0 %3412 }
 0x8da   :  { %v3424_v60 = vmul.f32 %v6262_v45, %v6262_v45  ;;  %v3417_v28 = vmul.f32 0.015625, %v3413_v18 }
 0x8dc   :  { %v3432_v30 = vsel %vm163_vm0, %v3424_v60, 0.0  ;;  %v3421_v54 = vsub.f32 %v153_v20, %v3417_v28 }
 0x8dd   :  { %3433 = vadd.xlane.f32.xlu0 %v3432_v30  ;;  %v3428_v40 = vpop.xlane.xlu0 %3427 }
 0x8de   :  { %v3438_v27 = vmul.f32 0.015625, %v3428_v40  ;;  %v3425_v22 = vmul.f32 %v3421_v54, %v3421_v54 }
 0x8e0   :  { %v3442_v17 = vadd.f32 1e-06, %v3438_v27  ;;  %v3435_v24 = vsel %vm163_vm0, %v3425_v22, 0.0  ;;  %v3400_v22 = vrot.slane %v6270_v21, %v185_v6 }
 0x8e2   :  { %5269 = vrsqrt.f32 %v3442_v17 }
 0x8ec   :  { %v5270_v51 = vpop.eup %5269 }
 0x8ed   :  { %v3450_v43 = vmul.f32 %v5270_v51, %v3418_v23 }
 0x8ef   :  { %v3458_v2 = vmul.f32 %v6275_v32, %v3450_v43 }
 0x8f1   :  { %v3466_v12 = vadd.f32 %v6280_v55, %v3458_v2 }
 0x8f3   :  { %4950 = vmatprep.mubr.msk.f32.mxu1 %vm163_vm0, %v3466_v12  ;;  %v3470_v12 = vld [vmem:[#allocation13] sm:$0xff] }
 0x96a   :  { %v3434_v49 = vpop.xlane.xlu0 %3433 }
 0x96b   :  { %v3440_v19 = vmul.f32 0.015625, %v3434_v49 }
 0x96c   :  { %v3373_v8 = vpop.f32.mrb[36].mxu1 }
 0x96d   :  { %v3374_v35 = vadd.f32 %v3373_v8, %v3303_v46  ;;  %v4914_v1 = vpop.f32.mrb[37].mxu1  ;;  %v3444_v63 = vadd.f32 1e-06, %v3440_v19  ;;  %v3472_v46 = vld [vmem:[#allocation13 + $0x10] sm:$0xff]  ;;  %v3475_v8 = vld [vmem:[#allocation13 + $0x28] sm:$0xff] }
 0x96e   :  { %v3476_v1 = vld [vmem:[#allocation13 + $0x30] sm:$0xff] }
 0x96f   :  { %v3377_v38 = vadd.f32 %v5296_v14, %v3374_v35  ;;  %5271 = vrsqrt.f32 %v3444_v63 }
 0x971   :  { %v3379_v42 = vsel %vm163_vm0, %v3377_v38, 0.0 }
 0x972   :  { %3380 = vadd.xlane.f32.xlu1 %v3379_v42  ;;  %v3395_v42 = vrot.slane %v6270_v21, %v5763_v62 }
 0x976   :  { %3430 = vadd.xlane.f32.xlu1 %v3429_v41 }
 0x979   :  { %v5272_v36 = vpop.eup %5271 }
 0x97a   :  { %3436 = vadd.xlane.f32.xlu1 %v3435_v24  ;;  %v3452_v29 = vmul.f32 %v5272_v36, %v6262_v45  ;;  %v5072_v45 = vpack.c.bf16 %v3471_v44, %v3470_v12 }
 0x97c   :  { %v3460_v18 = vmul.f32 %v6275_v32, %v3452_v29  ;;  %5073 = vmatpush3.bf16.msra.mxu0 %v5072_v45 }
 0x97d   :  { %5074 = vmatprep.subr.bf16.mxu0 %v5517_v5 }
 0x97e   :  { %v3468_v43 = vadd.f32 %v6280_v55, %v3460_v18 }
 0x9ff   :  { %v3381_v53 = vpop.xlane.xlu1 %3380 }
 0xa00   :  { %v3382_v20 = vmul.f32 0.015625, %v3381_v53 }
 0xa02   :  { %v3383_v61 = vsub.f32 %v3377_v38, %v3382_v20 }
 0xa03   :  { %v3431_v4 = vpop.xlane.xlu1 %3430 }
 0xa04   :  { %v3439_v3 = vmul.f32 0.015625, %v3431_v4  ;;  %v3384_v16 = vmul.f32 %v3383_v61, %v3383_v61 }
 0xa06   :  { %v3443_v57 = vadd.f32 1e-06, %v3439_v3  ;;  %v3385_v23 = vsel %vm163_vm0, %v3384_v16, 0.0 }
 0xa07   :  { %3386 = vadd.xlane.f32.xlu0 %v3385_v23  ;;  %v3437_v48 = vpop.xlane.xlu1 %3436 }
 0xa08   :  { %5273 = vrsqrt.f32 %v3443_v57  ;;  %v3441_v7 = vmul.f32 0.015625, %v3437_v48 }
 0xa0a   :  { %v3445_v56 = vadd.f32 1e-06, %v3441_v7 }
 0xa0c   :  { %5275 = vrsqrt.f32 %v3445_v56 }
 0xa12   :  { %v5274_v60 = vpop.eup %5273 }
 0xa13   :  { %v3451_v30 = vmul.f32 %v5274_v60, %v3419_v34  ;;  %v3473_v34 = vld [vmem:[#allocation13 + $0x18] sm:$0xff] }
 0xa14   :  { %v5075_v28 = vpack.c.bf16 %v3473_v34, %v3472_v46 }
 0xa15   :  { %v3459_v40 = vmul.f32 %v6275_v32, %v3451_v30 }
 0xa16   :  { %v5276_v27 = vpop.eup %5275  ;;  %5076 = vmatpush3.bf16.msra.mxu0 %v5075_v28 }
 0xa17   :  { %v3467_v17 = vadd.f32 %v6280_v55, %v3459_v40  ;;  %v3453_v51 = vmul.f32 %v5276_v27, %v3421_v54  ;;  %5077 = vmatprep.subr.bf16.mxu0 %v5517_v5 }
 0xa19   :  { %4951 = vmatmul.mubr.msk.f32.vlgmr.msra.gmra.mrb[38].mxu1 %vm163_vm0, %v3467_v17  ;;  %v3461_v2 = vmul.f32 %v6275_v32, %v3453_v51  ;;  %v3474_v32 = vld [vmem:[#allocation13 + $0x20] sm:$0xff] }
 0xa1a   :  { %4953 = vmatprep.mubr.msk.f32.mxu1 %vm163_vm0, %v3468_v43  ;;  %v5078_v35 = vpack.c.bf16 %v3475_v8, %v3474_v32 }
 0xa1b   :  { %v3469_v11 = vadd.f32 %v6280_v55, %v3461_v2  ;;  %v3477_v55 = vld [vmem:[#allocation13 + $0x38] sm:$0xff] }
 0xa1c   :  { %5079 = vmatpush3.bf16.msra.mxu0 %v5078_v35  ;;  %v5081_v54 = vpack.c.bf16 %v3477_v55, %v3476_v1 }
 0xa1d   :  { %4954 = vmatmul.mubr.msk.f32.gmra.mrb[40].mxu1 %vm163_vm0, %v3469_v11  ;;  %5080 = vmatprep.subr.bf16.mxu0 %v5517_v5 }
 0xa1e   :  { %4960 = vmatprep.mubr.msk.f32.mxu1 %vm5518_vm1, %v5519_v26 }
 0xa20   :  { %5082 = vmatpush3.bf16.msra.mxu0 %v5081_v54 }
 0xa21   :  { %5103 = vmatprep.subr.bf16.mxu0 %v5517_v5 }
 0xa94   :  { %v3387_v14 = vpop.xlane.xlu0 %3386 }
 0xa95   :  { %v3388_v38 = vmul.f32 0.015625, %v3387_v14 }
 0xa97   :  { %v3389_v39 = vadd.f32 1e-06, %v3388_v38 }
 0xa99   :  { %5277 = vrsqrt.f32 %v3389_v39 }
 0xaa3   :  { %v5278_v41 = vpop.eup %5277 }
 0xaa4   :  { %v3391_v24 = vmul.f32 %v5278_v41, %v3383_v61 }
 0xaa6   :  { %v3396_v47 = vmul.f32 %v3395_v42, %v3391_v24 }
 0xaa8   :  { %v3401_v9 = vadd.f32 %v3400_v22, %v3396_v47 }
 0xaaa   :  { %4932 = vmatmul.mubr.msk.f32.vlgmr.msra.gmra.mrb[38].mxu0 %vm163_vm0, %v3401_v9 }
 0xaab   :  { %4967 = vmatprep.mubr.msk.f32.mxu0 %vm5518_vm1, %v5519_v26 }
 0xaec   :  { %v4952_v10 = vpop.f32.mrb[38].mxu1 }
 0xaed   :  { %v3646_v58 = vpop.f32.mrb[39].mxu1 }
 0xaee   :  { %v6323_v62 = vpack.i.bf16 %v4952_v10, %v3646_v58  ;;  %v5100_v15 = vpack.c.bf16 %v4952_v10, %v3646_v58 }
 0xaf0   :  { %v4955_v6 = vpop.f32.mrb[40].mxu1  ;;  %5102 = vmatpush3.bf16.xpose.msk.msra.mxu1 %vm6319_vm12, %v5100_v15 }
 0xaf1   :  { %v3656_v33 = vpop.f32.mrb[41].mxu1  ;;  %5110 = vmatprep.subr.bf16.mxu1 %v5517_v5 }
 0xaf2   :  { %v6328_v13 = vpack.i.bf16 %v4955_v6, %v3656_v33  ;;  %v5104_v50 = vpack.c.bf16 %v4955_v6, %v3656_v33 }
 0xaf4   :  { %5106 = vmatpush3.bf16.xpose.msk.msra.mxu0 %vm6319_vm12, %v5104_v50 }
 0xaf5   :  { %5107 = vmatprep.subr.bf16.mxu0 %v5517_v5 }
 0xb7d   :  { %v3556_v59 = vpop.f32.mrb[38].mxu0 }
 0xb7e   :  { %v3666_v0 = vcombine.high %v3556_v59, %v3556_v59  ;;  %v4933_v52 = vpop.f32.mrb[39].mxu0  ;;  %4961 = vmatmul.mubr.msk.f32.vlgmr.msra.gmra.mrb[42].mxu1 %vm593_vm2, %v3556_v59 }
 0xb7f   :  { %4981 = vmatprep.mubr.msk.f32.mxu1 %vm5518_vm1, %v5519_v26 }
 0xb80   :  { %4968 = vmatmul.mubr.msk.f32.vlgmr.msra.gmra.mrb[40].mxu0 %vm593_vm2, %v3666_v0 }
 0xb81   :  { %4974 = vmatprep.mubr.msk.f32.mxu0 %vm5518_vm1, %v5519_v26 }
 0xc51   :  { %v3741_v49 = vpop.f32.mrb[42].mxu1 }
 0xc52   :  { %v4962_v19 = vpop.f32.mrb[43].mxu1  ;;  %v3824_v63 = vsel %vm3823_vm13, %v3741_v49, -inf }
 0xc53   :  { %v3819_v53 = vpop.f32.mrb[40].mxu0  ;;  %3825 = vmax.xlane.f32.xlu1 %v3824_v63 }
 0xc54   :  { %v4969_v20 = vpop.f32.mrb[41].mxu0  ;;  %v3827_v61 = vsel %vm3823_vm13, %v3819_v53, -inf }
 0xc55   :  { %3828 = vmax.xlane.f32.xlu0 %v3827_v61 }
 0xc64   :  { %5158 = vrot.lane.b32.xlu1 %v6323_v62, %s5521_s9 }
 0xce0   :  { %v3826_v4 = vpop.xlane.xlu1 %3825 }
 0xce1   :  { %v3830_v3 = vsub.f32 %v3741_v49, %v3826_v4 }
 0xce2   :  { %v3829_v16 = vpop.xlane.xlu0 %3828 }
 0xce3   :  { %v3832_v57 = vmul.f32 1.442695, %v3830_v3  ;;  %v3831_v23 = vsub.f32 %v3819_v53, %v3829_v16 }
 0xce4   :  { %v5159_v48 = vpop.permute.xlu1 %5158 }
 0xce5   :  { %5279 = vpow2.f32 %v3832_v57  ;;  %v3834_v7 = vmul.f32 1.442695, %v3831_v23  ;;  %v5161_v56 = vunpack.i.h.bf16 %v5159_v48  ;;  %v5160_v36 = vunpack.i.l.bf16 %v5159_v48 }
 0xce7   :  { %5281 = vpow2.f32 %v3834_v7  ;;  %v5108_v29 = vpack.c.bf16 %v5161_v56, %v5160_v36 }
 0xce9   :  { %5109 = vmatpush3.bf16.msra.mxu0 %v5108_v29 }
 0xcea   :  { %5113 = vmatprep.subr.bf16.mxu0 %v5517_v5 }
 0xcef   :  { %v5280_v60 = vpop.eup %5279 }
 0xcf0   :  { %v3836_v30 = vsel %vm3823_vm13, %v5280_v60, 0.0 }
 0xcf1   :  { %v5282_v18 = vpop.eup %5281  ;;  %3837 = vadd.xlane.f32.xlu1 %v3836_v30  ;;  %v3480_v30 = vld [vmem:[#allocation13 + $0x48] sm:$0xff] }
 0xcf2   :  { %v3839_v40 = vsel %vm3823_vm13, %v5282_v18, 0.0 }
 0xcf3   :  { %3840 = vadd.xlane.f32.xlu0 %v3839_v40 }
 0xd02   :  { %5168 = vrot.lane.b32.xlu1 %v6323_v62, %s5522_s23 }
 0xd06   :  { %5173 = vrot.lane.b32.xlu1 %v6328_v13, %s5522_s23 }
 0xd09   :  { %5163 = vrot.lane.b32.xlu0 %v6328_v13, %s5521_s9 }
 0xd0a   :  { %4005 = vrot.lane.b32.xlu1 %v3556_v59, %s5522_s23 }
 0xd0d   :  { %4087 = vrot.lane.b32.xlu0 %v3666_v0, %s5522_s23 }
 0xd7e   :  { %v3838_v27 = vpop.xlane.xlu1 %3837 }
 0xd7f   :  { %5283 = vrcp.f32 %v3838_v27  ;;  %v3482_v27 = vld [vmem:[#allocation13 + $0x58] sm:$0xff] }
 0xd80   :  { %v3841_v17 = vpop.xlane.xlu0 %3840 }
 0xd81   :  { %5285 = vrcp.f32 %v3841_v17 }
 0xd82   :  { %v5169_v51 = vpop.permute.xlu1 %5168 }
 0xd83   :  { %v5171_v44 = vunpack.i.h.bf16 %v5169_v51  ;;  %v5170_v45 = vunpack.i.l.bf16 %v5169_v51  ;;  %v3483_v51 = vld [vmem:[#allocation13 + $0x60] sm:$0xff] }
 0xd84   :  { %v5164_v43 = vpop.permute.xlu0 %5163 }
 0xd85   :  { %v5166_v2 = vunpack.i.h.bf16 %v5164_v43  ;;  %v5165_v12 = vunpack.i.l.bf16 %v5164_v43  ;;  %v5114_v8 = vpack.c.bf16 %v5171_v44, %v5170_v45  ;;  %v3484_v43 = vld [vmem:[#allocation13 + $0x68] sm:$0xff] }
 0xd86   :  { %v5174_v34 = vpop.permute.xlu1 %5173 }
 0xd87   :  { %v5111_v11 = vpack.c.bf16 %v5166_v2, %v5165_v12  ;;  %v5176_v1 = vunpack.i.h.bf16 %v5174_v34  ;;  %v5175_v55 = vunpack.i.l.bf16 %v5174_v34  ;;  %v5134_v2 = vpack.c.bf16 %v3484_v43, %v3483_v51  ;;  %v3486_v12 = vld [vmem:[#allocation13 + $0x78] sm:$0xff] }
 0xd88   :  { %v4088_v38 = vpop.permute.xlu0 %4087 }
 0xd89   :  { %v5284_v46 = vpop.eup %5283  ;;  %5112 = vmatpush3.bf16.msra.mxu1 %v5111_v11  ;;  %v5118_v54 = vpack.c.bf16 %v5176_v1, %v5175_v55 }
 0xd8a   :  { %v3844_v28 = vmul.f32 %v5284_v46, %v5280_v60  ;;  %5117 = vmatprep.subr.bf16.mxu1 %v5517_v5  ;;  %v4006_v14 = vpop.permute.xlu1 %4005 }
 0xd8b   :  { %v5286_v32 = vpop.eup %5285 }
 0xd8c   :  { %v3845_v35 = vmul.f32 %v5286_v32, %v5282_v18  ;;  %4975 = vmatmul.mubr.msk.f32.vlgmr.msra.gmra.mrb[42].mxu0 %vm3852_vm14, %v3844_v28  ;;  %v3481_v18 = vld [vmem:[#allocation13 + $0x50] sm:$0xff] }
 0xd8d   :  { %5116 = vmatpush3.bf16.xpose.msk.msra.mxu0 %vm6319_vm12, %v5114_v8  ;;  %4988 = vmatprep.mubr.msk.f32.mxu0 %vm5518_vm1, %v5519_v26  ;;  %v5131_v17 = vpack.c.bf16 %v3482_v27, %v3481_v18 }
 0xd8e   :  { %4982 = vmatmul.mubr.msk.f32.vlgmr.msra.gmra.mrb[44].mxu1 %vm3852_vm14, %v3845_v35  ;;  %5121 = vmatprep.subr.bf16.mxu0 %v5517_v5 }
 0xd8f   :  { %4995 = vmatprep.mubr.msk.f32.mxu1 %vm5518_vm1, %v5519_v26 }
 0xd92   :  { %5120 = vmatpush3.bf16.xpose.msk.msra.mxu1 %vm6319_vm12, %v5118_v54 }
 0xd93   :  { %5124 = vmatprep.subr.bf16.mxu1 %v5517_v5 }
 0xd94   :  { %4989 = vmatmul.mubr.msk.f32.vlgmr.msra.gmra.mrb[44].mxu0 %vm593_vm2, %v4006_v14 }
 0xd95   :  { %5002 = vmatprep.mubr.msk.f32.mxu0 %vm5518_vm1, %v5519_v26 }
 0xd99   :  { %4996 = vmatmul.mubr.msk.f32.vlgmr.msra.gmra.mrb[46].mxu1 %vm593_vm2, %v4088_v38 }
 0xd9a   :  { %5009 = vmatprep.mubr.msk.f32.mxu1 %vm5518_vm1, %v5519_v26 }
 0xe5f   :  { %v6373_v39 = vpop.f32.mrb[42].mxu0 }
 0xe60   :  { %v4976_v42 = vpop.f32.mrb[43].mxu0 }
 0xe61   :  { %v6375_v41 = vpop.f32.mrb[44].mxu1 }
 0xe62   :  { %v4351_v22 = vcombine.low %v6373_v39, %v6375_v41  ;;  %v4983_v24 = vpop.f32.mrb[45].mxu1 }
 0xe67   :  { %v4083_v47 = vpop.f32.mrb[44].mxu0 }
 0xe68   :  { %v4990_v9 = vpop.f32.mrb[45].mxu0  ;;  %v4169_v10 = vsel %vm3823_vm13, %v4083_v47, -inf }
 0xe69   :  { %4170 = vmax.xlane.f32.xlu1 %v4169_v10 }
 0xe6c   :  { %v4165_v58 = vpop.f32.mrb[46].mxu1 }
 0xe6d   :  { %v4997_v31 = vpop.f32.mrb[47].mxu1  ;;  %v4172_v15 = vsel %vm3823_vm13, %v4165_v58, -inf }
 0xe6e   :  { %4173 = vmax.xlane.f32.xlu0 %v4172_v15 }
 0xe7a   :  { %5178 = vrot.lane.b32.xlu1 %v6323_v62, %s5523_s3 }
 0xef6   :  { %v4171_v6 = vpop.xlane.xlu1 %4170 }
 0xef7   :  { %v4175_v33 = vsub.f32 %v4083_v47, %v4171_v6 }
 0xef9   :  { %v4177_v50 = vmul.f32 1.442695, %v4175_v33 }
 0xefa   :  { %v5179_v59 = vpop.permute.xlu1 %5178 }
 0xefb   :  { %5287 = vpow2.f32 %v4177_v50  ;;  %v5181_v0 = vunpack.i.h.bf16 %v5179_v59  ;;  %v5180_v52 = vunpack.i.l.bf16 %v5179_v59  ;;  %v4174_v49 = vpop.xlane.xlu0 %4173 }
 0xefc   :  { %v4176_v19 = vsub.f32 %v4165_v58, %v4174_v49 }
 0xefd   :  { %v5122_v63 = vpack.c.bf16 %v5181_v0, %v5180_v52 }
 0xefe   :  { %v4179_v53 = vmul.f32 1.442695, %v4176_v19 }
 0xeff   :  { %5123 = vmatpush3.bf16.msra.mxu0 %v5122_v63 }
 0xf00   :  { %5289 = vpow2.f32 %v4179_v53  ;;  %5127 = vmatprep.subr.bf16.mxu0 %v5517_v5 }
 0xf05   :  { %v5288_v20 = vpop.eup %5287 }
 0xf06   :  { %v4181_v61 = vsel %vm3823_vm13, %v5288_v20, 0.0 }
 0xf07   :  { %4182 = vadd.xlane.f32.xlu0 %v4181_v61 }
 0xf0a   :  { %v5290_v62 = vpop.eup %5289 }
 0xf0b   :  { %v4184_v4 = vsel %vm3823_vm13, %v5290_v62, 0.0 }
 0xf0c   :  { %4185 = vadd.xlane.f32.xlu0 %v4184_v4 }
 0xf22   :  { %5183 = vrot.lane.b32.xlu0 %v6328_v13, %s5523_s3  ;;  %v3479_v13 = vld [vmem:[#allocation13 + $0x40] sm:$0xff] }
 0xf23   :  { %v5128_v40 = vpack.c.bf16 %v3480_v30, %v3479_v13 }
 0xf94   :  { %v4183_v3 = vpop.xlane.xlu0 %4182 }
 0xf95   :  { %5291 = vrcp.f32 %v4183_v3 }
 0xf99   :  { %v4186_v16 = vpop.xlane.xlu0 %4185 }
 0xf9a   :  { %5293 = vrcp.f32 %v4186_v16 }
 0xf9d   :  { %v5184_v57 = vpop.permute.xlu0 %5183 }
 0xf9e   :  { %v5186_v23 = vunpack.i.h.bf16 %v5184_v57  ;;  %v5185_v48 = vunpack.i.l.bf16 %v5184_v57 }
 0xf9f   :  { %v5292_v7 = vpop.eup %5291 }
 0xfa0   :  { %v4189_v56 = vmul.f32 %v5292_v7, %v5288_v20  ;;  %v5125_v36 = vpack.c.bf16 %v5186_v23, %v5185_v48 }
 0xfa2   :  { %5003 = vmatmul.mubr.msk.f32.vlgmr.msra.gmra.mrb[46].mxu0 %vm3852_vm14, %v4189_v56  ;;  %5126 = vmatpush3.bf16.msra.mxu1 %v5125_v36 }
 0xfa3   :  { %5028 = vmatprep.mubr.msk.f32.mxu0 %vm5518_vm1, %v5519_v26  ;;  %5129 = vmatpush3.bf16.msra.mxu0 %v5128_v40  ;;  %v3485_v26 = vld [vmem:[#allocation13 + $0x70] sm:$0xff] }
 0xfa4   :  { %v5294_v29 = vpop.eup %5293  ;;  %5130 = vmatprep.subr.bf16.mxu0 %v5517_v5  ;;  %v5137_v44 = vpack.c.bf16 %v3486_v12, %v3485_v26 }
 0xfa5   :  { %v4190_v60 = vmul.f32 %v5294_v29, %v5290_v62 }
 0xfa7   :  { %5010 = vmatmul.mubr.msk.f32.vlgmr.msra.gmra.mrb[48].mxu1 %vm3852_vm14, %v4190_v60  ;;  %5132 = vmatpush3.bf16.msra.mxu0 %v5131_v17 }
 0xfa8   :  { %5133 = vmatprep.subr.bf16.mxu0 %v5517_v5 }
 0xfab   :  { %5135 = vmatpush3.bf16.msra.mxu0 %v5134_v2 }
 0xfac   :  { %5136 = vmatprep.subr.bf16.mxu0 %v5517_v5  ;;  %v4363_v5 = vrot.slane %v6270_v21, %v3302_v25 }
 0xfaf   :  { %5138 = vmatpush3.bf16.msra.mxu0 %v5137_v44 }
0x1075   :  { %v4266_v45 = vpop.f32.mrb[46].mxu0 }
0x1076   :  { %v5004_v11 = vpop.f32.mrb[47].mxu0 }
0x107a   :  { %v4345_v46 = vpop.f32.mrb[48].mxu1 }
0x107b   :  { %v4355_v34 = vcombine.low %v4266_v45, %v4345_v46  ;;  %v5011_v28 = vpop.f32.mrb[49].mxu1 }
0x107d   :  { %4356 = vrot.lane.b32.xlu1 %v4355_v34, %s5523_s3 }
0x10ef   :  { %v4357_v32 = vpop.permute.xlu1 %4356 }
0x10f0   :  { %v4359_v8 = vsel %vm593_vm2, %v4351_v22, %v4357_v32 }
0x10f1   :  { %5029 = vmatmul.mubr.msk.f32.vlgmr.msra.gmra.mrb[48].mxu0 %vm163_vm0, %v4359_v8 }
0x11c4   :  { %v4433_v35 = vpop.f32.mrb[48].mxu0 }
0x11c5   :  { %v4434_v1 = vadd.f32 %v4433_v35, %v4363_v5  ;;  %v5030_v55 = vpop.f32.mrb[49].mxu0 }
0x11c7   :  { %4437 = vst.msk [vmem:[#allocation16] sm:$0xff] %vm163_vm0, %v4434_v1 }
0x11c8   :  { %5484 = shalt.err (!%p5481_p12)
}
0x11c9   :  { %s5485_s30 = scalar_lea.hbm %s6427_s10, 128 }
0x11ca   :  { %p5486_p13 = scmp.ne.s32.totalorder %s6427_s10, %s5485_s30  ;;  %p5489_p0 = scmp.lt.u32.totalorder %s5485_s30, %s6427_s10 }
0x11cc   :  { %p5491_p1 = pnand %p5489_p0, %p5486_p13 }
0x11ce   :  { %5494 = shalt.err (!%p5491_p1)
}
0x11cf   :  { %4447 = dma.vmem_to_hbm [thread:$0]  %s4445_s19, 128, %s6427_s10, [#allocation4]  }
0x11d0   :  { %5505 = dma.done.wait [#allocation4], 128  }
0x11d1   :  { %5506 = vsyncadd [#allocation4], 4294967168 }
0x11d2   :  { %4451 = vsyncpa [#allocation3], 1 }
0x11d3   :  { %4452 = vsyncpa [#allocation6], 1 }
0x11d4   :  { %4453 = vsyncpa [#allocation9], 1 }
0x11d5   :  { %4454 = vsyncpa [#allocation12], 1 }
0x11d6   :  { %4455 = vsyncpa [#allocation15], 1 }
0x11d7   :  { %4456 = vsyncpa [#allocation4], 1 }

</bundles_post_ra>
